<compile_context>
chip_gen: v7x
topology: tpu7x:2x2x1
jax: 0.10.0
libtpu: 0.0.40
codegen_flags: <defaults>
</compile_context>

<pallas_src>
import functools

import jax
import jax.numpy as jnp
from jax import lax
from jax.experimental import pallas as pl
from jax.experimental.pallas import tpu as pltpu


# ----------------------------------------------------------------------------
# Shared glue: per-face constant tables (used by both the kernel wrapper and
# the pure-JAX reference, so both evaluate the exact same arithmetic).
# ----------------------------------------------------------------------------
def _face_tables(attr, uv, face_indices):
    fi = face_indices.astype(jnp.int32)
    uv = uv.astype(jnp.float32)
    attr = attr.astype(jnp.float32)
    tri_uv = uv[fi]          # [Nf, 3, 2]
    tri_attr = attr[fi]      # [Nf, 3, 3]

    v0, v1, v2 = tri_uv[:, 0], tri_uv[:, 1], tri_uv[:, 2]
    e1 = v1 - v0
    e2 = v2 - v0
    # Degenerate faces -> inf/nan coefficients -> NaN comparisons are false ->
    # face silently skipped.
    inv_den = 1.0 / (e1[:, 0] * e2[:, 1] - e2[:, 0] * e1[:, 1])

    av = e2[:, 1] * inv_den
    bv = -e2[:, 0] * inv_den
    cv = (e2[:, 0] * v0[:, 1] - e2[:, 1] * v0[:, 0]) * inv_den
    aw = -e1[:, 1] * inv_den
    bw = e1[:, 0] * inv_den
    cw = (e1[:, 1] * v0[:, 0] - e1[:, 0] * v0[:, 1]) * inv_den
    coeff = jnp.stack([av, bv, cv, aw, bw, cw], axis=1)      # [Nf, 6]

    a0 = tri_attr[:, 0]                                      # [Nf, 3]
    d1 = tri_attr[:, 1] - a0                                 # [Nf, 3]
    d2 = tri_attr[:, 2] - a0                                 # [Nf, 3]
    return tri_uv, coeff, a0, d1, d2


# ----------------------------------------------------------------------------
# Kernel
# ----------------------------------------------------------------------------
def _bake_kernel(nchunks_ref, flist_ref, tab_ref, out_ref, *,
                 res, stride, unroll, sub_h, check_every, early_exit):
    # nchunks_ref: SMEM i32 [T]            — per-tile face-chunk count
    # flist_ref:   SMEM i32 [T * stride]   — per-tile face index lists (dummy padded)
    # tab_ref:     SMEM f32 [(Nf + 1)*16]  — per-face constants:
    #              Av Bv Cv Aw Bw Cw | a0.rgb | (a1-a0).rgb | (a2-a0).rgb | pad
    # out_ref:     VMEM f32 [3, tile_h, tile_w]  — channel-first bake tile
    tile_h = out_ref.shape[1]
    tile_w = out_ref.shape[2]
    n_sub = tile_h // sub_h

    i = pl.program_id(0)
    j = pl.program_id(1)
    t = i * pl.num_programs(1) + j

    nchunks = nchunks_ref[t]
    list_base = t * stride
    inv_res = 1.0 / res
    total_px = float(sub_h * tile_w)

    col = lax.broadcasted_iota(jnp.int32, (sub_h, tile_w), 1) + j * tile_w
    px = (col.astype(jnp.float32) + 0.5) * inv_res            # loop invariant

    @pl.loop(0, n_sub)
    def _(s):
        row0 = i * tile_h + s * sub_h
        row = lax.broadcasted_iota(jnp.int32, (sub_h, tile_w), 0) + row0
        # TODO(synk): texture_baker.slang source not available; assuming
        # pixel-center sampling with the v axis flipped (row 0 <-> v = 1).
        py = 1.0 - (row.astype(jnp.float32) + 0.5) * inv_res

        zero = jnp.zeros((sub_h, tile_w), jnp.float32)

        def face_step(fid, found, r, g, b):
            base = fid * 16
            av = tab_ref[base + 0]
            bv = tab_ref[base + 1]
            cv = tab_ref[base + 2]
            aw = tab_ref[base + 3]
            bw = tab_ref[base + 4]
            cw = tab_ref[base + 5]
            v = av * px + bv * py + cv
            w = aw * px + bw * py + cw
            inside = (v >= 0.0) & (w >= 0.0) & (v + w <= 1.0)
            take = inside & (found == 0.0)

            a0r = tab_ref[base + 6]
            a0g = tab_ref[base + 7]
            a0b = tab_ref[base + 8]
            d1r = tab_ref[base + 9]
            d1g = tab_ref[base + 10]
            d1b = tab_ref[base + 11]
            d2r = tab_ref[base + 12]
            d2g = tab_ref[base + 13]
            d2b = tab_ref[base + 14]

            r = jnp.where(take, a0r + v * d1r + w * d2r, r)
            g = jnp.where(take, a0g + v * d1g + w * d2g, g)
            b = jnp.where(take, a0b + v * d1b + w * d2b, b)
            found = jnp.where(inside, 1.0, found)
            return found, r, g, b

        def run_chunk(c, found, r, g, b):
            f0 = list_base + c * unroll
            for u in range(unroll):        # static unroll: scalar loads co-issue
                found, r, g, b = face_step(flist_ref[f0 + u], found, r, g, b)
            return found, r, g, b

        if early_exit:
            def cond_fn(carry):
                c, done = carry[0], carry[1]
                return jnp.logical_and(c < nchunks, done == 0)

            def body_fn(carry):
                c, _, found, r, g, b = carry
                found, r, g, b = run_chunk(c, found, r, g, b)
                do_check = (c % check_every) == (check_every - 1)
                done = lax.cond(
                    do_check,
                    lambda: (jnp.sum(found) >= total_px).astype(jnp.int32),
                    lambda: jnp.int32(0))
                return c + 1, done, found, r, g, b

            init = (jnp.int32(0), jnp.int32(0), zero, zero, zero, zero)
            _, _, _, r, g, b = lax.while_loop(cond_fn, body_fn, init)
        else:
            def body_fn(c, carry):
                found, r, g, b = carry
                return run_chunk(c, found, r, g, b)

            _, r, g, b = lax.fori_loop(0, nchunks, body_fn,
                                       (zero, zero, zero, zero))

        off = pl.multiple_of(s * sub_h, sub_h)
        out_ref[0, pl.ds(off, sub_h), :] = r
        out_ref[1, pl.ds(off, sub_h), :] = g
        out_ref[2, pl.ds(off, sub_h), :] = b


# ----------------------------------------------------------------------------
# Wrapper
# ----------------------------------------------------------------------------
@functools.partial(
    jax.jit,
    static_argnums=(3,),
    static_argnames=("tile_h", "tile_w", "sub_h", "unroll", "check_every",
                     "early_exit", "vmem_limit_bytes"),
)
def texture_baker_forward(attr, uv, face_indices, bake_resolution, *,
                          tile_h=None, tile_w=None, sub_h=8, unroll=4,
                          check_every=8, early_exit=True,
                          vmem_limit_bytes=None):
    """Fused rasterize + interpolate. Returns (res, res, 3) float32."""
    res = int(bake_resolution)
    unroll = max(1, int(unroll))
    check_every = max(1, int(check_every))
    nf = int(face_indices.shape[0])

    # ---- static tiling decisions --------------------------------------------
    if res % 8 != 0:
        tile_h = tile_w = sub_h = res          # tiny/odd res: one full block
    if tile_w is None:
        tile_w = res
        for c in (512, 256, 128):              # lane-dense, multiple of 128
            if res % c == 0 and res // c >= 2:
                tile_w = c
                break
    if tile_h is None:
        tile_h = res
        n_col_t = res // tile_w
        for t_ in (64, 32, 16, 8):             # smaller bands -> better culling
            if res % t_ == 0:
                tile_h = t_
                if (res // t_) * n_col_t >= 2:  # >=2 parallel steps (v7x 2 TCs)
                    break

    # Coarsen if the flat SMEM face lists would blow past a conservative budget.
    # TODO(synk): replace the dense per-tile lists with CSR + per-tile
    # BlockSpec'd SMEM slices to scale to very large meshes without losing
    # 2-D culling.
    stride = nf + ((-nf) % unroll)

    def _list_bytes(th, tw):
        return 4 * (res // th) * (res // tw) * stride

    while _list_bytes(tile_h, tile_w) > (1 << 20):
        if tile_h < res and res % (2 * tile_h) == 0:
            tile_h *= 2
        elif tile_w < res:
            tile_w = res
        else:
            break

    assert res % tile_h == 0 and res % tile_w == 0
    assert tile_h % sub_h == 0
    assert tile_h == res or tile_h % 8 == 0
    assert tile_w == res or tile_w % 128 == 0
    n_row = res // tile_h
    n_col = res // tile_w
    n_tiles = n_row * n_col

    # ---- per-face constant tables (flat 1-D SMEM, 16 f32 / face) ------------
    tri_uv, coeff, a0, d1, d2 = _face_tables(attr, uv, face_indices)
    tab = jnp.concatenate(
        [coeff, a0, d1, d2, jnp.zeros((nf, 1), jnp.float32)], axis=1)   # [Nf,16]
    dummy = jnp.zeros((1, 16), jnp.float32).at[0, 2].set(-1.0)  # Cv=-1: never inside
    tab_flat = jnp.concatenate([tab, dummy], axis=0).reshape(-1)        # [(Nf+1)*16]

    # ---- 2-D (u, v) tile culling (order preserving -> identical first hit) --
    umin = tri_uv[:, :, 0].min(axis=1)
    umax = tri_uv[:, :, 0].max(axis=1)
    vmin = tri_uv[:, :, 1].min(axis=1)
    vmax = tri_uv[:, :, 1].max(axis=1)
    ri = jnp.arange(n_row, dtype=jnp.float32)
    v_hi = 1.0 - ri * (tile_h / res)
    v_lo = 1.0 - (ri + 1.0) * (tile_h / res)
    ci = jnp.arange(n_col, dtype=jnp.float32)
    u_lo = ci * (tile_w / res)
    u_hi = (ci + 1.0) * (tile_w / res)
    row_ov = (vmax[None, :] >= v_lo[:, None]) & (vmin[None, :] <= v_hi[:, None])
    col_ov = (umax[None, :] >= u_lo[:, None]) & (umin[None, :] <= u_hi[:, None])
    overlap = (row_ov[:, None, :] & col_ov[None, :, :]).reshape(n_tiles, nf)

    farange = jnp.arange(nf, dtype=jnp.int32)
    # Candidate faces first (original order preserved), then misses; entries
    # past the count are replaced by the dummy face index `nf`.
    keys = jnp.where(overlap, farange[None, :], nf + farange[None, :])
    face_list = jnp.argsort(keys, axis=1).astype(jnp.int32)             # [T, Nf]
    counts = overlap.sum(axis=1).astype(jnp.int32)                      # [T]
    pos = jnp.arange(nf, dtype=jnp.int32)[None, :]
    face_list = jnp.where(pos < counts[:, None], face_list, nf)
    pad = stride - nf
    if pad:
        face_list = jnp.concatenate(
            [face_list, jnp.full((n_tiles, pad), nf, jnp.int32)], axis=1)
    flist_flat = face_list.reshape(-1)                                  # [T*stride]
    n_chunks = (counts + (unroll - 1)) // unroll                        # [T]

    cp_kwargs = dict(dimension_semantics=("parallel", "parallel"))
    if vmem_limit_bytes is not None:
        cp_kwargs["vmem_limit_bytes"] = vmem_limit_bytes

    cost = pl.CostEstimate(
        flops=32 * res * res * max(nf, 1),
        transcendentals=0,
        bytes_accessed=(4 * 3 * res * res
                        + 4 * n_tiles * stride
                        + 4 * (nf + 1) * 16
                        + 4 * n_tiles))

    out_cfirst = pl.pallas_call(
        functools.partial(_bake_kernel, res=res, stride=stride, unroll=unroll,
                          sub_h=sub_h, check_every=check_every,
                          early_exit=early_exit),
        out_shape=jax.ShapeDtypeStruct((3, res, res), jnp.float32),
        grid=(n_row, n_col),
        in_specs=[
            pl.BlockSpec(memory_space=pltpu.MemorySpace.SMEM),   # n_chunks
            pl.BlockSpec(memory_space=pltpu.MemorySpace.SMEM),   # face lists
            pl.BlockSpec(memory_space=pltpu.MemorySpace.SMEM),   # face table
        ],
        out_specs=pl.BlockSpec((3, tile_h, tile_w), lambda i, j: (0, i, j)),
        compiler_params=pltpu.CompilerParams(**cp_kwargs),
        cost_estimate=cost,
    )(n_chunks, flist_flat, tab_flat)

    # Kernel writes channel-first (3,H,W) so W is lane-dense; the PyTorch
    # module returns (H,W,3).  TODO(synk): return channel-first / fuse this
    # layout change into the consumer to save an extra HBM pass of the image.
    return jnp.transpose(out_cfirst, (1, 2, 0))


# ----------------------------------------------------------------------------
# Pure-JAX reference with identical semantics (for validation).
# ----------------------------------------------------------------------------
def texture_baker_forward_ref(attr, uv, face_indices, res):
    _, coeff, a0, d1, d2 = _face_tables(attr, uv, face_indices)
    ys, xs = jnp.meshgrid(jnp.arange(res, dtype=jnp.float32),
                          jnp.arange(res, dtype=jnp.float32), indexing="ij")
    px = (xs + 0.5) * (1.0 / res)
    py = 1.0 - (ys + 0.5) * (1.0 / res)
    v = coeff[:, 0] * px[..., None] + coeff[:, 1] * py[..., None] + coeff[:, 2]
    w = coeff[:, 3] * px[..., None] + coeff[:, 4] * py[..., None] + coeff[:, 5]
    inside = (v >= 0.0) & (w >= 0.0) & (v + w <= 1.0)          # [H, W, Nf]
    any_hit = inside.any(-1)
    first = jnp.argmax(inside, axis=-1)                        # first hit face
    vv = jnp.take_along_axis(v, first[..., None], -1)[..., 0]
    ww = jnp.take_along_axis(w, first[..., None], -1)[..., 0]
    out = a0[first] + vv[..., None] * d1[first] + ww[..., None] * d2[first]
    return jnp.where(any_hit[..., None], out, 0.0)


if __name__ == "__main__":
    key = jax.random.PRNGKey(0)
    k_uv, k_attr, k_perm = jax.random.split(key, 3)

    Nv = 48
    Nf = 16
    uv = jax.random.uniform(k_uv, (Nv, 2), dtype=jnp.float32)
    attr = jax.random.normal(k_attr, (Nv, 3), dtype=jnp.float32)
    # Distinct vertex indices per face (avoid degenerate zero-area triangles).
    face_indices = jax.random.permutation(
        k_perm, jnp.arange(Nv, dtype=jnp.int32))[: Nf * 3].reshape(Nf, 3)

    # --- res=64: auto tiling (2 row bands -> 2 parallel steps for v7x),
    #     early-exit face loop, 8-row vreg-resident sub-tiles.
    res = 64
    ref = jax.block_until_ready(
        texture_baker_forward_ref(attr, uv, face_indices, res))
    out = jax.block_until_ready(
        texture_baker_forward(attr, uv, face_indices, res))
    assert out.shape == (res, res, 3)
    assert out.dtype == jnp.float32
    assert jnp.allclose(out, ref, atol=1e-5, rtol=1e-5), (
        float(jnp.max(jnp.abs(out - ref))))

    # --- res=64: finer row bands, multiple in-kernel sub-tiles, fori path
    #     (early_exit=False) to exercise both loop variants.
    out2 = jax.block_until_ready(
        texture_baker_forward(attr, uv, face_indices, res,
                              tile_h=16, early_exit=False))
    assert jnp.allclose(out2, ref, atol=1e-5, rtol=1e-5), (
        float(jnp.max(jnp.abs(out2 - ref))))

    # --- res=256: true 2-D (u, v) tile culling (grid 8x2, tile_w=128),
    #     early exit with a shorter check period and unroll=2.
    res2 = 256
    ref2 = jax.block_until_ready(
        texture_baker_forward_ref(attr, uv, face_indices, res2))
    out3 = jax.block_until_ready(
        texture_baker_forward(attr, uv, face_indices, res2,
                              tile_h=32, tile_w=128, unroll=2, check_every=4))
    assert out3.shape == (res2, res2, 3)
    assert jnp.allclose(out3, ref2, atol=1e-5, rtol=1e-5), (
        float(jnp.max(jnp.abs(out3 - ref2))))

    print("KERNEL_OK")
</pallas_src>

<mosaic_0001>
module attributes {stable_mosaic.version = 11 : i64} {
  func.func @_bake_kernel(%arg0: i32, %arg1: i32, %arg2: memref<2xi32, #tpu.memory_space<smem>>, %arg3: memref<32xi32, #tpu.memory_space<smem>>, %arg4: memref<272xf32, #tpu.memory_space<smem>>, %arg5: memref<3x32x64xf32, #tpu.memory_space<vmem>>) attributes {dimension_semantics = [#tpu.dimension_semantics<parallel>, #tpu.dimension_semantics<parallel>], iteration_bounds = array<i64: 2, 1>, scalar_prefetch = 0 : i64, scratch_operands = 0 : i64, tpu.core_type = #tpu.core_type<tc>, window_params = [{transform_indices = @transform_0, window_bounds = array<i64: 2>}, {transform_indices = @transform_1, window_bounds = array<i64: 32>}, {transform_indices = @transform_2, window_bounds = array<i64: 272>}, {transform_indices = @transform_3, window_bounds = array<i64: 3, 32, 64>}]} {
    %c1_i32 = arith.constant 1 : i32
    %0 = arith.muli %arg0, %c1_i32 : i32
    %1 = arith.addi %0, %arg1 : i32
    %2 = arith.index_cast %1 : i32 to index
    %3 = memref.load %arg2[%2] : memref<2xi32, #tpu.memory_space<smem>>
    %c16_i32 = arith.constant 16 : i32
    %4 = arith.muli %1, %c16_i32 : i32
    %5 = tpu.iota {dimensions = array<i32: 1>} : vector<8x64xi32>
    %c64_i32 = arith.constant 64 : i32
    %6 = arith.muli %arg1, %c64_i32 : i32
    %7 = vector.broadcast %6 : i32 to vector<8x64xi32>
    %8 = arith.addi %5, %7 : vector<8x64xi32>
    %9 = arith.sitofp %8 : vector<8x64xi32> to vector<8x64xf32>
    %cst = arith.constant 5.000000e-01 : f32
    %10 = vector.broadcast %cst : f32 to vector<8x64xf32>
    %11 = arith.addf %9, %10 : vector<8x64xf32>
    %cst_0 = arith.constant 1.562500e-02 : f32
    %12 = vector.broadcast %cst_0 : f32 to vector<8x64xf32>
    %13 = arith.mulf %11, %12 : vector<8x64xf32>
    %c0_i32 = arith.constant 0 : i32
    %c4_i32 = arith.constant 4 : i32
    %14 = arith.addi %c0_i32, %c4_i32 : i32
    %c1_i32_1 = arith.constant 1 : i32
    scf.for %arg6 = %c0_i32 to %14 step %c1_i32_1  : i32 {
      %c1_i32_3 = arith.constant 1 : i32
      %15 = arith.muli %arg6, %c1_i32_3 : i32
      %c0_i32_4 = arith.constant 0 : i32
      %16 = arith.addi %c0_i32_4, %15 : i32
      %c32_i32 = arith.constant 32 : i32
      %17 = arith.muli %arg0, %c32_i32 : i32
      %c8_i32 = arith.constant 8 : i32
      %18 = arith.muli %16, %c8_i32 : i32
      %19 = arith.addi %17, %18 : i32
      %20 = tpu.iota {dimensions = array<i32: 0>} : vector<8x64xi32>
      %21 = vector.broadcast %19 : i32 to vector<8x64xi32>
      %22 = arith.addi %20, %21 : vector<8x64xi32>
      %23 = arith.sitofp %22 : vector<8x64xi32> to vector<8x64xf32>
      %cst_5 = arith.constant 5.000000e-01 : f32
      %24 = vector.broadcast %cst_5 : f32 to vector<8x64xf32>
      %25 = arith.addf %23, %24 : vector<8x64xf32>
      %cst_6 = arith.constant 1.562500e-02 : f32
      %26 = vector.broadcast %cst_6 : f32 to vector<8x64xf32>
      %27 = arith.mulf %25, %26 : vector<8x64xf32>
      %cst_7 = arith.constant 1.000000e+00 : f32
      %28 = vector.broadcast %cst_7 : f32 to vector<8x64xf32>
      %29 = arith.subf %28, %27 : vector<8x64xf32>
      %cst_8 = arith.constant 0.000000e+00 : f32
      %30 = vector.broadcast %cst_8 : f32 to vector<8x64xf32>
      %c0_i32_9 = arith.constant 0 : i32
      %c0_i32_10 = arith.constant 0 : i32
      %31:6 = scf.while (%arg7 = %c0_i32_9, %arg8 = %c0_i32_10, %arg9 = %30, %arg10 = %30, %arg11 = %30, %arg12 = %30) : (i32, i32, vector<8x64xf32>, vector<8x64xf32>, vector<8x64xf32>, vector<8x64xf32>) -> (i32, i32, vector<8x64xf32>, vector<8x64xf32>, vector<8x64xf32>, vector<8x64xf32>) {
        %46 = arith.cmpi slt, %arg7, %3 : i32
        %c0_i32_15 = arith.constant 0 : i32
        %47 = arith.cmpi eq, %arg8, %c0_i32_15 : i32
        %48 = arith.andi %46, %47 : i1
        scf.condition(%48) %arg7, %arg8, %arg9, %arg10, %arg11, %arg12 : i32, i32, vector<8x64xf32>, vector<8x64xf32>, vector<8x64xf32>, vector<8x64xf32>
      } do {
      ^bb0(%arg7: i32, %arg8: i32, %arg9: vector<8x64xf32>, %arg10: vector<8x64xf32>, %arg11: vector<8x64xf32>, %arg12: vector<8x64xf32>):
        %c4_i32_15 = arith.constant 4 : i32
        %46 = arith.muli %arg7, %c4_i32_15 : i32
        %47 = arith.addi %4, %46 : i32
        %c0_i32_16 = arith.constant 0 : i32
        %48 = arith.addi %47, %c0_i32_16 : i32
        %49 = arith.index_cast %48 : i32 to index
        %50 = memref.load %arg3[%49] : memref<32xi32, #tpu.memory_space<smem>>
        %c16_i32_17 = arith.constant 16 : i32
        %51 = arith.muli %50, %c16_i32_17 : i32
        %c0_i32_18 = arith.constant 0 : i32
        %52 = arith.addi %51, %c0_i32_18 : i32
        %53 = arith.index_cast %52 : i32 to index
        %54 = memref.load %arg4[%53] : memref<272xf32, #tpu.memory_space<smem>>
        %c1_i32_19 = arith.constant 1 : i32
        %55 = arith.addi %51, %c1_i32_19 : i32
        %56 = arith.index_cast %55 : i32 to index
        %57 = memref.load %arg4[%56] : memref<272xf32, #tpu.memory_space<smem>>
        %c2_i32 = arith.constant 2 : i32
        %58 = arith.addi %51, %c2_i32 : i32
        %59 = arith.index_cast %58 : i32 to index
        %60 = memref.load %arg4[%59] : memref<272xf32, #tpu.memory_space<smem>>
        %c3_i32 = arith.constant 3 : i32
        %61 = arith.addi %51, %c3_i32 : i32
        %62 = arith.index_cast %61 : i32 to index
        %63 = memref.load %arg4[%62] : memref<272xf32, #tpu.memory_space<smem>>
        %c4_i32_20 = arith.constant 4 : i32
        %64 = arith.addi %51, %c4_i32_20 : i32
        %65 = arith.index_cast %64 : i32 to index
        %66 = memref.load %arg4[%65] : memref<272xf32, #tpu.memory_space<smem>>
        %c5_i32 = arith.constant 5 : i32
        %67 = arith.addi %51, %c5_i32 : i32
        %68 = arith.index_cast %67 : i32 to index
        %69 = memref.load %arg4[%68] : memref<272xf32, #tpu.memory_space<smem>>
        %70 = vector.broadcast %54 : f32 to vector<8x64xf32>
        %71 = arith.mulf %70, %13 : vector<8x64xf32>
        %72 = vector.broadcast %57 : f32 to vector<8x64xf32>
        %73 = arith.mulf %72, %29 : vector<8x64xf32>
        %74 = arith.addf %71, %73 : vector<8x64xf32>
        %75 = vector.broadcast %60 : f32 to vector<8x64xf32>
        %76 = arith.addf %74, %75 : vector<8x64xf32>
        %77 = vector.broadcast %63 : f32 to vector<8x64xf32>
        %78 = arith.mulf %77, %13 : vector<8x64xf32>
        %79 = vector.broadcast %66 : f32 to vector<8x64xf32>
        %80 = arith.mulf %79, %29 : vector<8x64xf32>
        %81 = arith.addf %78, %80 : vector<8x64xf32>
        %82 = vector.broadcast %69 : f32 to vector<8x64xf32>
        %83 = arith.addf %81, %82 : vector<8x64xf32>
        %cst_21 = arith.constant 0.000000e+00 : f32
        %84 = vector.broadcast %cst_21 : f32 to vector<8x64xf32>
        %85 = arith.cmpf oge, %76, %84 : vector<8x64xf32>
        %cst_22 = arith.constant 0.000000e+00 : f32
        %86 = vector.broadcast %cst_22 : f32 to vector<8x64xf32>
        %87 = arith.cmpf oge, %83, %86 : vector<8x64xf32>
        %88 = arith.andi %85, %87 : vector<8x64xi1>
        %89 = arith.addf %76, %83 : vector<8x64xf32>
        %cst_23 = arith.constant 1.000000e+00 : f32
        %90 = vector.broadcast %cst_23 : f32 to vector<8x64xf32>
        %91 = arith.cmpf ole, %89, %90 : vector<8x64xf32>
        %92 = arith.andi %88, %91 : vector<8x64xi1>
        %cst_24 = arith.constant 0.000000e+00 : f32
        %93 = vector.broadcast %cst_24 : f32 to vector<8x64xf32>
        %94 = arith.cmpf oeq, %arg9, %93 : vector<8x64xf32>
        %95 = arith.andi %92, %94 : vector<8x64xi1>
        %c6_i32 = arith.constant 6 : i32
        %96 = arith.addi %51, %c6_i32 : i32
        %97 = arith.index_cast %96 : i32 to index
        %98 = memref.load %arg4[%97] : memref<272xf32, #tpu.memory_space<smem>>
        %c7_i32 = arith.constant 7 : i32
        %99 = arith.addi %51, %c7_i32 : i32
        %100 = arith.index_cast %99 : i32 to index
        %101 = memref.load %arg4[%100] : memref<272xf32, #tpu.memory_space<smem>>
        %c8_i32_25 = arith.constant 8 : i32
        %102 = arith.addi %51, %c8_i32_25 : i32
        %103 = arith.index_cast %102 : i32 to index
        %104 = memref.load %arg4[%103] : memref<272xf32, #tpu.memory_space<smem>>
        %c9_i32 = arith.constant 9 : i32
        %105 = arith.addi %51, %c9_i32 : i32
        %106 = arith.index_cast %105 : i32 to index
        %107 = memref.load %arg4[%106] : memref<272xf32, #tpu.memory_space<smem>>
        %c10_i32 = arith.constant 10 : i32
        %108 = arith.addi %51, %c10_i32 : i32
        %109 = arith.index_cast %108 : i32 to index
        %110 = memref.load %arg4[%109] : memref<272xf32, #tpu.memory_space<smem>>
        %c11_i32 = arith.constant 11 : i32
        %111 = arith.addi %51, %c11_i32 : i32
        %112 = arith.index_cast %111 : i32 to index
        %113 = memref.load %arg4[%112] : memref<272xf32, #tpu.memory_space<smem>>
        %c12_i32 = arith.constant 12 : i32
        %114 = arith.addi %51, %c12_i32 : i32
        %115 = arith.index_cast %114 : i32 to index
        %116 = memref.load %arg4[%115] : memref<272xf32, #tpu.memory_space<smem>>
        %c13_i32 = arith.constant 13 : i32
        %117 = arith.addi %51, %c13_i32 : i32
        %118 = arith.index_cast %117 : i32 to index
        %119 = memref.load %arg4[%118] : memref<272xf32, #tpu.memory_space<smem>>
        %c14_i32 = arith.constant 14 : i32
        %120 = arith.addi %51, %c14_i32 : i32
        %121 = arith.index_cast %120 : i32 to index
        %122 = memref.load %arg4[%121] : memref<272xf32, #tpu.memory_space<smem>>
        %123 = vector.broadcast %107 : f32 to vector<8x64xf32>
        %124 = arith.mulf %76, %123 : vector<8x64xf32>
        %125 = vector.broadcast %98 : f32 to vector<8x64xf32>
        %126 = arith.addf %125, %124 : vector<8x64xf32>
        %127 = vector.broadcast %116 : f32 to vector<8x64xf32>
        %128 = arith.mulf %83, %127 : vector<8x64xf32>
        %129 = arith.addf %126, %128 : vector<8x64xf32>
        %130 = arith.select %95, %129, %arg10 : vector<8x64xi1>, vector<8x64xf32>
        %131 = vector.broadcast %110 : f32 to vector<8x64xf32>
        %132 = arith.mulf %76, %131 : vector<8x64xf32>
        %133 = vector.broadcast %101 : f32 to vector<8x64xf32>
        %134 = arith.addf %133, %132 : vector<8x64xf32>
        %135 = vector.broadcast %119 : f32 to vector<8x64xf32>
        %136 = arith.mulf %83, %135 : vector<8x64xf32>
        %137 = arith.addf %134, %136 : vector<8x64xf32>
        %138 = arith.select %95, %137, %arg11 : vector<8x64xi1>, vector<8x64xf32>
        %139 = vector.broadcast %113 : f32 to vector<8x64xf32>
        %140 = arith.mulf %76, %139 : vector<8x64xf32>
        %141 = vector.broadcast %104 : f32 to vector<8x64xf32>
        %142 = arith.addf %141, %140 : vector<8x64xf32>
        %143 = vector.broadcast %122 : f32 to vector<8x64xf32>
        %144 = arith.mulf %83, %143 : vector<8x64xf32>
        %145 = arith.addf %142, %144 : vector<8x64xf32>
        %146 = arith.select %95, %145, %arg12 : vector<8x64xi1>, vector<8x64xf32>
        %cst_26 = arith.constant 1.000000e+00 : f32
        %147 = vector.broadcast %cst_26 : f32 to vector<8x64xf32>
        %148 = arith.select %92, %147, %arg9 : vector<8x64xi1>, vector<8x64xf32>
        %c1_i32_27 = arith.constant 1 : i32
        %149 = arith.addi %47, %c1_i32_27 : i32
        %150 = arith.index_cast %149 : i32 to index
        %151 = memref.load %arg3[%150] : memref<32xi32, #tpu.memory_space<smem>>
        %c16_i32_28 = arith.constant 16 : i32
        %152 = arith.muli %151, %c16_i32_28 : i32
        %c0_i32_29 = arith.constant 0 : i32
        %153 = arith.addi %152, %c0_i32_29 : i32
        %154 = arith.index_cast %153 : i32 to index
        %155 = memref.load %arg4[%154] : memref<272xf32, #tpu.memory_space<smem>>
        %c1_i32_30 = arith.constant 1 : i32
        %156 = arith.addi %152, %c1_i32_30 : i32
        %157 = arith.index_cast %156 : i32 to index
        %158 = memref.load %arg4[%157] : memref<272xf32, #tpu.memory_space<smem>>
        %c2_i32_31 = arith.constant 2 : i32
        %159 = arith.addi %152, %c2_i32_31 : i32
        %160 = arith.index_cast %159 : i32 to index
        %161 = memref.load %arg4[%160] : memref<272xf32, #tpu.memory_space<smem>>
        %c3_i32_32 = arith.constant 3 : i32
        %162 = arith.addi %152, %c3_i32_32 : i32
        %163 = arith.index_cast %162 : i32 to index
        %164 = memref.load %arg4[%163] : memref<272xf32, #tpu.memory_space<smem>>
        %c4_i32_33 = arith.constant 4 : i32
        %165 = arith.addi %152, %c4_i32_33 : i32
        %166 = arith.index_cast %165 : i32 to index
        %167 = memref.load %arg4[%166] : memref<272xf32, #tpu.memory_space<smem>>
        %c5_i32_34 = arith.constant 5 : i32
        %168 = arith.addi %152, %c5_i32_34 : i32
        %169 = arith.index_cast %168 : i32 to index
        %170 = memref.load %arg4[%169] : memref<272xf32, #tpu.memory_space<smem>>
        %171 = vector.broadcast %155 : f32 to vector<8x64xf32>
        %172 = arith.mulf %171, %13 : vector<8x64xf32>
        %173 = vector.broadcast %158 : f32 to vector<8x64xf32>
        %174 = arith.mulf %173, %29 : vector<8x64xf32>
        %175 = arith.addf %172, %174 : vector<8x64xf32>
        %176 = vector.broadcast %161 : f32 to vector<8x64xf32>
        %177 = arith.addf %175, %176 : vector<8x64xf32>
        %178 = vector.broadcast %164 : f32 to vector<8x64xf32>
        %179 = arith.mulf %178, %13 : vector<8x64xf32>
        %180 = vector.broadcast %167 : f32 to vector<8x64xf32>
        %181 = arith.mulf %180, %29 : vector<8x64xf32>
        %182 = arith.addf %179, %181 : vector<8x64xf32>
        %183 = vector.broadcast %170 : f32 to vector<8x64xf32>
        %184 = arith.addf %182, %183 : vector<8x64xf32>
        %cst_35 = arith.constant 0.000000e+00 : f32
        %185 = vector.broadcast %cst_35 : f32 to vector<8x64xf32>
        %186 = arith.cmpf oge, %177, %185 : vector<8x64xf32>
        %cst_36 = arith.constant 0.000000e+00 : f32
        %187 = vector.broadcast %cst_36 : f32 to vector<8x64xf32>
        %188 = arith.cmpf oge, %184, %187 : vector<8x64xf32>
        %189 = arith.andi %186, %188 : vector<8x64xi1>
        %190 = arith.addf %177, %184 : vector<8x64xf32>
        %cst_37 = arith.constant 1.000000e+00 : f32
        %191 = vector.broadcast %cst_37 : f32 to vector<8x64xf32>
        %192 = arith.cmpf ole, %190, %191 : vector<8x64xf32>
        %193 = arith.andi %189, %192 : vector<8x64xi1>
        %cst_38 = arith.constant 0.000000e+00 : f32
        %194 = vector.broadcast %cst_38 : f32 to vector<8x64xf32>
        %195 = arith.cmpf oeq, %148, %194 : vector<8x64xf32>
        %196 = arith.andi %193, %195 : vector<8x64xi1>
        %c6_i32_39 = arith.constant 6 : i32
        %197 = arith.addi %152, %c6_i32_39 : i32
        %198 = arith.index_cast %197 : i32 to index
        %199 = memref.load %arg4[%198] : memref<272xf32, #tpu.memory_space<smem>>
        %c7_i32_40 = arith.constant 7 : i32
        %200 = arith.addi %152, %c7_i32_40 : i32
        %201 = arith.index_cast %200 : i32 to index
        %202 = memref.load %arg4[%201] : memref<272xf32, #tpu.memory_space<smem>>
        %c8_i32_41 = arith.constant 8 : i32
        %203 = arith.addi %152, %c8_i32_41 : i32
        %204 = arith.index_cast %203 : i32 to index
        %205 = memref.load %arg4[%204] : memref<272xf32, #tpu.memory_space<smem>>
        %c9_i32_42 = arith.constant 9 : i32
        %206 = arith.addi %152, %c9_i32_42 : i32
        %207 = arith.index_cast %206 : i32 to index
        %208 = memref.load %arg4[%207] : memref<272xf32, #tpu.memory_space<smem>>
        %c10_i32_43 = arith.constant 10 : i32
        %209 = arith.addi %152, %c10_i32_43 : i32
        %210 = arith.index_cast %209 : i32 to index
        %211 = memref.load %arg4[%210] : memref<272xf32, #tpu.memory_space<smem>>
        %c11_i32_44 = arith.constant 11 : i32
        %212 = arith.addi %152, %c11_i32_44 : i32
        %213 = arith.index_cast %212 : i32 to index
        %214 = memref.load %arg4[%213] : memref<272xf32, #tpu.memory_space<smem>>
        %c12_i32_45 = arith.constant 12 : i32
        %215 = arith.addi %152, %c12_i32_45 : i32
        %216 = arith.index_cast %215 : i32 to index
        %217 = memref.load %arg4[%216] : memref<272xf32, #tpu.memory_space<smem>>
        %c13_i32_46 = arith.constant 13 : i32
        %218 = arith.addi %152, %c13_i32_46 : i32
        %219 = arith.index_cast %218 : i32 to index
        %220 = memref.load %arg4[%219] : memref<272xf32, #tpu.memory_space<smem>>
        %c14_i32_47 = arith.constant 14 : i32
        %221 = arith.addi %152, %c14_i32_47 : i32
        %222 = arith.index_cast %221 : i32 to index
        %223 = memref.load %arg4[%222] : memref<272xf32, #tpu.memory_space<smem>>
        %224 = vector.broadcast %208 : f32 to vector<8x64xf32>
        %225 = arith.mulf %177, %224 : vector<8x64xf32>
        %226 = vector.broadcast %199 : f32 to vector<8x64xf32>
        %227 = arith.addf %226, %225 : vector<8x64xf32>
        %228 = vector.broadcast %217 : f32 to vector<8x64xf32>
        %229 = arith.mulf %184, %228 : vector<8x64xf32>
        %230 = arith.addf %227, %229 : vector<8x64xf32>
        %231 = arith.select %196, %230, %130 : vector<8x64xi1>, vector<8x64xf32>
        %232 = vector.broadcast %211 : f32 to vector<8x64xf32>
        %233 = arith.mulf %177, %232 : vector<8x64xf32>
        %234 = vector.broadcast %202 : f32 to vector<8x64xf32>
        %235 = arith.addf %234, %233 : vector<8x64xf32>
        %236 = vector.broadcast %220 : f32 to vector<8x64xf32>
        %237 = arith.mulf %184, %236 : vector<8x64xf32>
        %238 = arith.addf %235, %237 : vector<8x64xf32>
        %239 = arith.select %196, %238, %138 : vector<8x64xi1>, vector<8x64xf32>
        %240 = vector.broadcast %214 : f32 to vector<8x64xf32>
        %241 = arith.mulf %177, %240 : vector<8x64xf32>
        %242 = vector.broadcast %205 : f32 to vector<8x64xf32>
        %243 = arith.addf %242, %241 : vector<8x64xf32>
        %244 = vector.broadcast %223 : f32 to vector<8x64xf32>
        %245 = arith.mulf %184, %244 : vector<8x64xf32>
        %246 = arith.addf %243, %245 : vector<8x64xf32>
        %247 = arith.select %196, %246, %146 : vector<8x64xi1>, vector<8x64xf32>
        %cst_48 = arith.constant 1.000000e+00 : f32
        %248 = vector.broadcast %cst_48 : f32 to vector<8x64xf32>
        %249 = arith.select %193, %248, %148 : vector<8x64xi1>, vector<8x64xf32>
        %c2_i32_49 = arith.constant 2 : i32
        %250 = arith.addi %47, %c2_i32_49 : i32
        %251 = arith.index_cast %250 : i32 to index
        %252 = memref.load %arg3[%251] : memref<32xi32, #tpu.memory_space<smem>>
        %c16_i32_50 = arith.constant 16 : i32
        %253 = arith.muli %252, %c16_i32_50 : i32
        %c0_i32_51 = arith.constant 0 : i32
        %254 = arith.addi %253, %c0_i32_51 : i32
        %255 = arith.index_cast %254 : i32 to index
        %256 = memref.load %arg4[%255] : memref<272xf32, #tpu.memory_space<smem>>
        %c1_i32_52 = arith.constant 1 : i32
        %257 = arith.addi %253, %c1_i32_52 : i32
        %258 = arith.index_cast %257 : i32 to index
        %259 = memref.load %arg4[%258] : memref<272xf32, #tpu.memory_space<smem>>
        %c2_i32_53 = arith.constant 2 : i32
        %260 = arith.addi %253, %c2_i32_53 : i32
        %261 = arith.index_cast %260 : i32 to index
        %262 = memref.load %arg4[%261] : memref<272xf32, #tpu.memory_space<smem>>
        %c3_i32_54 = arith.constant 3 : i32
        %263 = arith.addi %253, %c3_i32_54 : i32
        %264 = arith.index_cast %263 : i32 to index
        %265 = memref.load %arg4[%264] : memref<272xf32, #tpu.memory_space<smem>>
        %c4_i32_55 = arith.constant 4 : i32
        %266 = arith.addi %253, %c4_i32_55 : i32
        %267 = arith.index_cast %266 : i32 to index
        %268 = memref.load %arg4[%267] : memref<272xf32, #tpu.memory_space<smem>>
        %c5_i32_56 = arith.constant 5 : i32
        %269 = arith.addi %253, %c5_i32_56 : i32
        %270 = arith.index_cast %269 : i32 to index
        %271 = memref.load %arg4[%270] : memref<272xf32, #tpu.memory_space<smem>>
        %272 = vector.broadcast %256 : f32 to vector<8x64xf32>
        %273 = arith.mulf %272, %13 : vector<8x64xf32>
        %274 = vector.broadcast %259 : f32 to vector<8x64xf32>
        %275 = arith.mulf %274, %29 : vector<8x64xf32>
        %276 = arith.addf %273, %275 : vector<8x64xf32>
        %277 = vector.broadcast %262 : f32 to vector<8x64xf32>
        %278 = arith.addf %276, %277 : vector<8x64xf32>
        %279 = vector.broadcast %265 : f32 to vector<8x64xf32>
        %280 = arith.mulf %279, %13 : vector<8x64xf32>
        %281 = vector.broadcast %268 : f32 to vector<8x64xf32>
        %282 = arith.mulf %281, %29 : vector<8x64xf32>
        %283 = arith.addf %280, %282 : vector<8x64xf32>
        %284 = vector.broadcast %271 : f32 to vector<8x64xf32>
        %285 = arith.addf %283, %284 : vector<8x64xf32>
        %cst_57 = arith.constant 0.000000e+00 : f32
        %286 = vector.broadcast %cst_57 : f32 to vector<8x64xf32>
        %287 = arith.cmpf oge, %278, %286 : vector<8x64xf32>
        %cst_58 = arith.constant 0.000000e+00 : f32
        %288 = vector.broadcast %cst_58 : f32 to vector<8x64xf32>
        %289 = arith.cmpf oge, %285, %288 : vector<8x64xf32>
        %290 = arith.andi %287, %289 : vector<8x64xi1>
        %291 = arith.addf %278, %285 : vector<8x64xf32>
        %cst_59 = arith.constant 1.000000e+00 : f32
        %292 = vector.broadcast %cst_59 : f32 to vector<8x64xf32>
        %293 = arith.cmpf ole, %291, %292 : vector<8x64xf32>
        %294 = arith.andi %290, %293 : vector<8x64xi1>
        %cst_60 = arith.constant 0.000000e+00 : f32
        %295 = vector.broadcast %cst_60 : f32 to vector<8x64xf32>
        %296 = arith.cmpf oeq, %249, %295 : vector<8x64xf32>
        %297 = arith.andi %294, %296 : vector<8x64xi1>
        %c6_i32_61 = arith.constant 6 : i32
        %298 = arith.addi %253, %c6_i32_61 : i32
        %299 = arith.index_cast %298 : i32 to index
        %300 = memref.load %arg4[%299] : memref<272xf32, #tpu.memory_space<smem>>
        %c7_i32_62 = arith.constant 7 : i32
        %301 = arith.addi %253, %c7_i32_62 : i32
        %302 = arith.index_cast %301 : i32 to index
        %303 = memref.load %arg4[%302] : memref<272xf32, #tpu.memory_space<smem>>
        %c8_i32_63 = arith.constant 8 : i32
        %304 = arith.addi %253, %c8_i32_63 : i32
        %305 = arith.index_cast %304 : i32 to index
        %306 = memref.load %arg4[%305] : memref<272xf32, #tpu.memory_space<smem>>
        %c9_i32_64 = arith.constant 9 : i32
        %307 = arith.addi %253, %c9_i32_64 : i32
        %308 = arith.index_cast %307 : i32 to index
        %309 = memref.load %arg4[%308] : memref<272xf32, #tpu.memory_space<smem>>
        %c10_i32_65 = arith.constant 10 : i32
        %310 = arith.addi %253, %c10_i32_65 : i32
        %311 = arith.index_cast %310 : i32 to index
        %312 = memref.load %arg4[%311] : memref<272xf32, #tpu.memory_space<smem>>
        %c11_i32_66 = arith.constant 11 : i32
        %313 = arith.addi %253, %c11_i32_66 : i32
        %314 = arith.index_cast %313 : i32 to index
        %315 = memref.load %arg4[%314] : memref<272xf32, #tpu.memory_space<smem>>
        %c12_i32_67 = arith.constant 12 : i32
        %316 = arith.addi %253, %c12_i32_67 : i32
        %317 = arith.index_cast %316 : i32 to index
        %318 = memref.load %arg4[%317] : memref<272xf32, #tpu.memory_space<smem>>
        %c13_i32_68 = arith.constant 13 : i32
        %319 = arith.addi %253, %c13_i32_68 : i32
        %320 = arith.index_cast %319 : i32 to index
        %321 = memref.load %arg4[%320] : memref<272xf32, #tpu.memory_space<smem>>
        %c14_i32_69 = arith.constant 14 : i32
        %322 = arith.addi %253, %c14_i32_69 : i32
        %323 = arith.index_cast %322 : i32 to index
        %324 = memref.load %arg4[%323] : memref<272xf32, #tpu.memory_space<smem>>
        %325 = vector.broadcast %309 : f32 to vector<8x64xf32>
        %326 = arith.mulf %278, %325 : vector<8x64xf32>
        %327 = vector.broadcast %300 : f32 to vector<8x64xf32>
        %328 = arith.addf %327, %326 : vector<8x64xf32>
        %329 = vector.broadcast %318 : f32 to vector<8x64xf32>
        %330 = arith.mulf %285, %329 : vector<8x64xf32>
        %331 = arith.addf %328, %330 : vector<8x64xf32>
        %332 = arith.select %297, %331, %231 : vector<8x64xi1>, vector<8x64xf32>
        %333 = vector.broadcast %312 : f32 to vector<8x64xf32>
        %334 = arith.mulf %278, %333 : vector<8x64xf32>
        %335 = vector.broadcast %303 : f32 to vector<8x64xf32>
        %336 = arith.addf %335, %334 : vector<8x64xf32>
        %337 = vector.broadcast %321 : f32 to vector<8x64xf32>
        %338 = arith.mulf %285, %337 : vector<8x64xf32>
        %339 = arith.addf %336, %338 : vector<8x64xf32>
        %340 = arith.select %297, %339, %239 : vector<8x64xi1>, vector<8x64xf32>
        %341 = vector.broadcast %315 : f32 to vector<8x64xf32>
        %342 = arith.mulf %278, %341 : vector<8x64xf32>
        %343 = vector.broadcast %306 : f32 to vector<8x64xf32>
        %344 = arith.addf %343, %342 : vector<8x64xf32>
        %345 = vector.broadcast %324 : f32 to vector<8x64xf32>
        %346 = arith.mulf %285, %345 : vector<8x64xf32>
        %347 = arith.addf %344, %346 : vector<8x64xf32>
        %348 = arith.select %297, %347, %247 : vector<8x64xi1>, vector<8x64xf32>
        %cst_70 = arith.constant 1.000000e+00 : f32
        %349 = vector.broadcast %cst_70 : f32 to vector<8x64xf32>
        %350 = arith.select %294, %349, %249 : vector<8x64xi1>, vector<8x64xf32>
        %c3_i32_71 = arith.constant 3 : i32
        %351 = arith.addi %47, %c3_i32_71 : i32
        %352 = arith.index_cast %351 : i32 to index
        %353 = memref.load %arg3[%352] : memref<32xi32, #tpu.memory_space<smem>>
        %c16_i32_72 = arith.constant 16 : i32
        %354 = arith.muli %353, %c16_i32_72 : i32
        %c0_i32_73 = arith.constant 0 : i32
        %355 = arith.addi %354, %c0_i32_73 : i32
        %356 = arith.index_cast %355 : i32 to index
        %357 = memref.load %arg4[%356] : memref<272xf32, #tpu.memory_space<smem>>
        %c1_i32_74 = arith.constant 1 : i32
        %358 = arith.addi %354, %c1_i32_74 : i32
        %359 = arith.index_cast %358 : i32 to index
        %360 = memref.load %arg4[%359] : memref<272xf32, #tpu.memory_space<smem>>
        %c2_i32_75 = arith.constant 2 : i32
        %361 = arith.addi %354, %c2_i32_75 : i32
        %362 = arith.index_cast %361 : i32 to index
        %363 = memref.load %arg4[%362] : memref<272xf32, #tpu.memory_space<smem>>
        %c3_i32_76 = arith.constant 3 : i32
        %364 = arith.addi %354, %c3_i32_76 : i32
        %365 = arith.index_cast %364 : i32 to index
        %366 = memref.load %arg4[%365] : memref<272xf32, #tpu.memory_space<smem>>
        %c4_i32_77 = arith.constant 4 : i32
        %367 = arith.addi %354, %c4_i32_77 : i32
        %368 = arith.index_cast %367 : i32 to index
        %369 = memref.load %arg4[%368] : memref<272xf32, #tpu.memory_space<smem>>
        %c5_i32_78 = arith.constant 5 : i32
        %370 = arith.addi %354, %c5_i32_78 : i32
        %371 = arith.index_cast %370 : i32 to index
        %372 = memref.load %arg4[%371] : memref<272xf32, #tpu.memory_space<smem>>
        %373 = vector.broadcast %357 : f32 to vector<8x64xf32>
        %374 = arith.mulf %373, %13 : vector<8x64xf32>
        %375 = vector.broadcast %360 : f32 to vector<8x64xf32>
        %376 = arith.mulf %375, %29 : vector<8x64xf32>
        %377 = arith.addf %374, %376 : vector<8x64xf32>
        %378 = vector.broadcast %363 : f32 to vector<8x64xf32>
        %379 = arith.addf %377, %378 : vector<8x64xf32>
        %380 = vector.broadcast %366 : f32 to vector<8x64xf32>
        %381 = arith.mulf %380, %13 : vector<8x64xf32>
        %382 = vector.broadcast %369 : f32 to vector<8x64xf32>
        %383 = arith.mulf %382, %29 : vector<8x64xf32>
        %384 = arith.addf %381, %383 : vector<8x64xf32>
        %385 = vector.broadcast %372 : f32 to vector<8x64xf32>
        %386 = arith.addf %384, %385 : vector<8x64xf32>
        %cst_79 = arith.constant 0.000000e+00 : f32
        %387 = vector.broadcast %cst_79 : f32 to vector<8x64xf32>
        %388 = arith.cmpf oge, %379, %387 : vector<8x64xf32>
        %cst_80 = arith.constant 0.000000e+00 : f32
        %389 = vector.broadcast %cst_80 : f32 to vector<8x64xf32>
        %390 = arith.cmpf oge, %386, %389 : vector<8x64xf32>
        %391 = arith.andi %388, %390 : vector<8x64xi1>
        %392 = arith.addf %379, %386 : vector<8x64xf32>
        %cst_81 = arith.constant 1.000000e+00 : f32
        %393 = vector.broadcast %cst_81 : f32 to vector<8x64xf32>
        %394 = arith.cmpf ole, %392, %393 : vector<8x64xf32>
        %395 = arith.andi %391, %394 : vector<8x64xi1>
        %cst_82 = arith.constant 0.000000e+00 : f32
        %396 = vector.broadcast %cst_82 : f32 to vector<8x64xf32>
        %397 = arith.cmpf oeq, %350, %396 : vector<8x64xf32>
        %398 = arith.andi %395, %397 : vector<8x64xi1>
        %c6_i32_83 = arith.constant 6 : i32
        %399 = arith.addi %354, %c6_i32_83 : i32
        %400 = arith.index_cast %399 : i32 to index
        %401 = memref.load %arg4[%400] : memref<272xf32, #tpu.memory_space<smem>>
        %c7_i32_84 = arith.constant 7 : i32
        %402 = arith.addi %354, %c7_i32_84 : i32
        %403 = arith.index_cast %402 : i32 to index
        %404 = memref.load %arg4[%403] : memref<272xf32, #tpu.memory_space<smem>>
        %c8_i32_85 = arith.constant 8 : i32
        %405 = arith.addi %354, %c8_i32_85 : i32
        %406 = arith.index_cast %405 : i32 to index
        %407 = memref.load %arg4[%406] : memref<272xf32, #tpu.memory_space<smem>>
        %c9_i32_86 = arith.constant 9 : i32
        %408 = arith.addi %354, %c9_i32_86 : i32
        %409 = arith.index_cast %408 : i32 to index
        %410 = memref.load %arg4[%409] : memref<272xf32, #tpu.memory_space<smem>>
        %c10_i32_87 = arith.constant 10 : i32
        %411 = arith.addi %354, %c10_i32_87 : i32
        %412 = arith.index_cast %411 : i32 to index
        %413 = memref.load %arg4[%412] : memref<272xf32, #tpu.memory_space<smem>>
        %c11_i32_88 = arith.constant 11 : i32
        %414 = arith.addi %354, %c11_i32_88 : i32
        %415 = arith.index_cast %414 : i32 to index
        %416 = memref.load %arg4[%415] : memref<272xf32, #tpu.memory_space<smem>>
        %c12_i32_89 = arith.constant 12 : i32
        %417 = arith.addi %354, %c12_i32_89 : i32
        %418 = arith.index_cast %417 : i32 to index
        %419 = memref.load %arg4[%418] : memref<272xf32, #tpu.memory_space<smem>>
        %c13_i32_90 = arith.constant 13 : i32
        %420 = arith.addi %354, %c13_i32_90 : i32
        %421 = arith.index_cast %420 : i32 to index
        %422 = memref.load %arg4[%421] : memref<272xf32, #tpu.memory_space<smem>>
        %c14_i32_91 = arith.constant 14 : i32
        %423 = arith.addi %354, %c14_i32_91 : i32
        %424 = arith.index_cast %423 : i32 to index
        %425 = memref.load %arg4[%424] : memref<272xf32, #tpu.memory_space<smem>>
        %426 = vector.broadcast %410 : f32 to vector<8x64xf32>
        %427 = arith.mulf %379, %426 : vector<8x64xf32>
        %428 = vector.broadcast %401 : f32 to vector<8x64xf32>
        %429 = arith.addf %428, %427 : vector<8x64xf32>
        %430 = vector.broadcast %419 : f32 to vector<8x64xf32>
        %431 = arith.mulf %386, %430 : vector<8x64xf32>
        %432 = arith.addf %429, %431 : vector<8x64xf32>
        %433 = arith.select %398, %432, %332 : vector<8x64xi1>, vector<8x64xf32>
        %434 = vector.broadcast %413 : f32 to vector<8x64xf32>
        %435 = arith.mulf %379, %434 : vector<8x64xf32>
        %436 = vector.broadcast %404 : f32 to vector<8x64xf32>
        %437 = arith.addf %436, %435 : vector<8x64xf32>
        %438 = vector.broadcast %422 : f32 to vector<8x64xf32>
        %439 = arith.mulf %386, %438 : vector<8x64xf32>
        %440 = arith.addf %437, %439 : vector<8x64xf32>
        %441 = arith.select %398, %440, %340 : vector<8x64xi1>, vector<8x64xf32>
        %442 = vector.broadcast %416 : f32 to vector<8x64xf32>
        %443 = arith.mulf %379, %442 : vector<8x64xf32>
        %444 = vector.broadcast %407 : f32 to vector<8x64xf32>
        %445 = arith.addf %444, %443 : vector<8x64xf32>
        %446 = vector.broadcast %425 : f32 to vector<8x64xf32>
        %447 = arith.mulf %386, %446 : vector<8x64xf32>
        %448 = arith.addf %445, %447 : vector<8x64xf32>
        %449 = arith.select %398, %448, %348 : vector<8x64xi1>, vector<8x64xf32>
        %cst_92 = arith.constant 1.000000e+00 : f32
        %450 = vector.broadcast %cst_92 : f32 to vector<8x64xf32>
        %451 = arith.select %395, %450, %350 : vector<8x64xi1>, vector<8x64xf32>
        %c8_i32_93 = arith.constant 8 : i32
        %c0_i32_94 = arith.constant 0 : i32
        %452 = arith.cmpi eq, %c8_i32_93, %c0_i32_94 : i32
        %c1_i32_95 = arith.constant 1 : i32
        %453 = arith.select %452, %c1_i32_95, %c8_i32_93 : i32
        %454 = arith.remsi %arg7, %453 : i32
        %c0_i32_96 = arith.constant 0 : i32
        %455 = arith.cmpi ne, %454, %c0_i32_96 : i32
        %c0_i32_97 = arith.constant 0 : i32
        %456 = arith.cmpi slt, %454, %c0_i32_97 : i32
        %c0_i32_98 = arith.constant 0 : i32
        %457 = arith.cmpi slt, %453, %c0_i32_98 : i32
        %458 = arith.xori %456, %457 : i1
        %459 = arith.andi %458, %455 : i1
        %460 = arith.addi %454, %453 : i32
        %461 = arith.select %459, %460, %454 : i32
        %c7_i32_99 = arith.constant 7 : i32
        %462 = arith.cmpi eq, %461, %c7_i32_99 : i32
        %463 = arith.extui %462 : i1 to i32
        %c0_i32_100 = arith.constant 0 : i32
        %464 = arith.cmpi ne, %463, %c0_i32_100 : i32
        %465 = scf.if %464 -> (i32) {
          %467 = vector.shape_cast %451 : vector<8x64xf32> to vector<1x8x64xf32>
          %cst_102 = arith.constant dense<0.000000e+00> : vector<1xf32>
          %468 = vector.multi_reduction <add>, %467, %cst_102 [1, 2] : vector<1x8x64xf32> to vector<1xf32>
          %469 = vector.shape_cast %468 : vector<1xf32> to vector<1x1x1xf32>
          %470 = vector.extract %469[0, 0, 0] : f32 from vector<1x1x1xf32>
          %cst_103 = arith.constant 5.120000e+02 : f32
          %471 = arith.cmpf oge, %470, %cst_103 : f32
          %472 = arith.extui %471 : i1 to i32
          scf.yield %472 : i32
        } else {
          %c0_i32_102 = arith.constant 0 : i32
          scf.yield %c0_i32_102 : i32
        }
        %c1_i32_101 = arith.constant 1 : i32
        %466 = arith.addi %arg7, %c1_i32_101 : i32
        scf.yield %466, %465, %451, %433, %441, %449 : i32, i32, vector<8x64xf32>, vector<8x64xf32>, vector<8x64xf32>, vector<8x64xf32>
      }
      %c8_i32_11 = arith.constant 8 : i32
      %32 = arith.muli %16, %c8_i32_11 : i32
      %33 = tpu.assume_multiple %32, 8 : i32
      %c0 = arith.constant 0 : index
      %34 = arith.index_cast %33 : i32 to index
      %c0_12 = arith.constant 0 : index
      %35 = vector.load %arg5[%c0, %34, %c0_12] : memref<3x32x64xf32, #tpu.memory_space<vmem>>, vector<1x8x64xf32>
      %36 = vector.shape_cast %35 : vector<1x8x64xf32> to vector<8x64xf32>
      %37 = vector.shape_cast %31#3 : vector<8x64xf32> to vector<1x8x64xf32>
      tpu.vector_store %arg5[%c0, %34, %c0_12], %37 {strides = array<i32>} : memref<3x32x64xf32, #tpu.memory_space<vmem>>, vector<1x8x64xf32>,
      %c1 = arith.constant 1 : index
      %38 = arith.index_cast %33 : i32 to index
      %c0_13 = arith.constant 0 : index
      %39 = vector.load %arg5[%c1, %38, %c0_13] : memref<3x32x64xf32, #tpu.memory_space<vmem>>, vector<1x8x64xf32>
      %40 = vector.shape_cast %39 : vector<1x8x64xf32> to vector<8x64xf32>
      %41 = vector.shape_cast %31#4 : vector<8x64xf32> to vector<1x8x64xf32>
      tpu.vector_store %arg5[%c1, %38, %c0_13], %41 {strides = array<i32>} : memref<3x32x64xf32, #tpu.memory_space<vmem>>, vector<1x8x64xf32>,
      %c2 = arith.constant 2 : index
      %42 = arith.index_cast %33 : i32 to index
      %c0_14 = arith.constant 0 : index
      %43 = vector.load %arg5[%c2, %42, %c0_14] : memref<3x32x64xf32, #tpu.memory_space<vmem>>, vector<1x8x64xf32>
      %44 = vector.shape_cast %43 : vector<1x8x64xf32> to vector<8x64xf32>
      %45 = vector.shape_cast %31#5 : vector<8x64xf32> to vector<1x8x64xf32>
      tpu.vector_store %arg5[%c2, %42, %c0_14], %45 {strides = array<i32>} : memref<3x32x64xf32, #tpu.memory_space<vmem>>, vector<1x8x64xf32>,
    }
    %c4_i32_2 = arith.constant 4 : i32
    return
  }
  func.func @transform_0(%arg0: i32, %arg1: i32) -> i32 {
    %c0_i32 = arith.constant 0 : i32
    %c0_i32_0 = arith.constant 0 : i32
    return %c0_i32 : i32
  }
  func.func @transform_1(%arg0: i32, %arg1: i32) -> i32 {
    %c0_i32 = arith.constant 0 : i32
    %c0_i32_0 = arith.constant 0 : i32
    return %c0_i32 : i32
  }
  func.func @transform_2(%arg0: i32, %arg1: i32) -> i32 {
    %c0_i32 = arith.constant 0 : i32
    %c0_i32_0 = arith.constant 0 : i32
    return %c0_i32 : i32
  }
  func.func @transform_3(%arg0: i32, %arg1: i32) -> (i32, i32, i32) {
    %c0_i32 = arith.constant 0 : i32
    %c0_i32_0 = arith.constant 0 : i32
    return %c0_i32, %arg0, %arg1 : i32, i32, i32
  }
}

</mosaic_0001>

<bundles_post_ra>
// kernel: texture_baker_forward.1
= control target key start
LH: loop header
LB: loop body
LE: loop exit
PB: predicated region body
PF: predicated region fallthrough
CT: control target
= control target key end

     0   :  { %s1881_s0 = inlined_call_operand.vmem [shape: s32[2], index: 0, kind: input, shape index: {}]   ;;  %s1882_s1 = inlined_call_operand.vmem [shape: s32[32], index: 1, kind: input, shape index: {}]   ;;  %s1883_s2 = inlined_call_operand.vmem [shape: f32[272], index: 2, kind: input, shape index: {}]   ;;  %s1884_s3 = inlined_call_operand.hbm [shape: f32[3,64,64], index: 3, kind: output, shape index: {}]  }
   0x1   :  { %1906 = sst [smem:[#allocation27_spill]] %s1881_s0 }
   0x2   :  { %1907 = sst [smem:[#allocation28_spill]] %s1882_s1 }
   0x3   :  { %1908 = sst [smem:[#allocation29_spill]] %s1883_s2 }
   0x4   :  { %1909 = sst [smem:[#allocation30_spill]] %s1884_s3 }
   0x5   :  { %8 = vsyncpa [#allocation4], 0 }
   0x6   :  { %9 = vsyncpa [#allocation6], 0 }
   0x7   :  { %10 = vsyncpa [#allocation3], 0 }
   0x8   :  { %12 = vsyncpa [#allocation3 + $0x1], 0  ;;  %s1207_s12 = smov 0   ;;  %s1209_s13 = smov 0  }
   0x9   :  { %s1211_s14 = smov 0   ;;  %s1213_s15 = smov 0  }
   0xa   :  { %s1215_s16 = smov 0   ;;  %s1217_s17 = smov 0  }
   0xb LB: > { %1910 = sst [smem:[#allocation14_spill]] %s1115_s12  ;;  %s773_s18 = sadd.s32 4294967295, %s1135_s17   ;;  %s1135_s17 = sphi %s1217_s17, %s18_s17   ;;  %s1131_s16 = sphi %s1215_s16, %s1983_s16   ;;  %s1127_s15 = sphi %s1213_s15, %s1982_s15   ;;  %s1123_s14 = sphi %s1211_s14, %s1981_s14   ;;  %s1119_s13 = sphi %s1209_s13, %s1980_s13   ;;  %s1115_s12 = sphi %s1207_s12, %s1979_s12  }
   0xc   : > { %1911 = sst [smem:[#allocation15_spill]] %s1119_s13  ;;  %s774_s19 = sadd.s32 4294967294, %s1135_s17  }
   0xd   : > { %1912 = sst [smem:[#allocation16_spill]] %s1123_s14  ;;  %s30_s20 = sadd.s32 1, %s1131_s16 }
   0xe   : > { %1913 = sst [smem:[#allocation17_spill]] %s1127_s15  ;;  %s102_s21 = sadd.s32 1, %s1123_s14 }
   0xf   : > { %1914 = sst [smem:[#allocation18_spill]] %s1131_s16  ;;  %p32_p0 = scmp.ge.s32.totalorder %s30_s20, 2 }
  0x10   : > { %1915 = sst [smem:[#allocation19_spill]] %s1135_s17  ;;  %p112_p1 = scmp.ne.s32.totalorder %s1123_s14, %s1119_s13 }
  0x11   : > { %p113_p2 = scmp.eq.s32.totalorder %s773_s18, 1  ;;  %p118_p3 = scmp.ne.s32.totalorder %s1119_s13, %s1115_s12 }
  0x12   : > { %s1985_s20 = smov (%p32_p0, %s30_s20), 0  ;;  %p119_p5 = scmp.eq.s32.totalorder %s774_s19, 1 }
  0x13   : > { %1916 = sst [smem:[#allocation20_spill]] %s1985_s20  ;;  %p1247_p4 = por %p113_p2, %p112_p1 }
  0x14   : > { %s97_s23 = ssub.s32 %s1131_s16, %s1985_s20  ;;  %p775_p6 = scmp.ge.s32.totalorder %s1135_s17, 1 }
  0x15   : > { %s1917_s22 = scalar_select %p1247_p4, 1, 0 }
  0x16   : > { %p100_p7 = scmp.eq.s32.totalorder %s97_s23, 0  ;;  %p1254_p8 = por %p119_p5, %p118_p3 }
  0x17   : > { %1918 = sst [smem:[#allocation21_spill]] %s1917_s22  ;;  %p126_p9 = scmp.lt.s32.totalorder %s1135_s17, 3 }
  0x18   : > { %s1919_s24 = scalar_select %p1254_p8, 1, 0 }
  0x19   : > { %s1260_s25 = scalar_select %p100_p7, %s1123_s14, %s102_s21  }
  0x1a   : > { %1920 = sst [smem:[#allocation22_spill]] %s1919_s24  ;;  %p1262_p10 = pnand %p775_p6, %p126_p9 }
  0x1b   : > { %1921 = sst [smem:[#allocation23_spill]] %s1260_s25  ;;  %p1266_p11 = scmp.eq.s32.totalorder %s773_s18, 0 }
  0x1c   : > { %s1922_s26 = scalar_select %p1262_p10, 1, 0 }
  0x1d   : > { %s1923_s27 = scalar_select %p1266_p11, 1, 0 }
  0x1e   : > { %s1924_s1 = sld [smem:[#allocation28_spill]]  ;;  %p832_p12 = pneg %p1262_p10 }
  0x1f   : > { %s1925_s0 = sld [smem:[#allocation27_spill]]  ;;  %s1927_s2 = sld [smem:[#allocation29_spill]] }
  0x20   : > { %p1280_p13 = pnand %p1266_p11, %p832_p12 }
  0x22   : > { %p994_p1 = pneg %p1280_p13 }
  0x24   : > { %s150_s30 = sshll.u32 %s1924_s1, 4  ;;  %s151_s30 = int_to_ptr.vmem [resolvable:$true] %s150_s30 }
  0x25   : > { %s139_s6 = sshll.u32 %s1925_s0, 4  ;;  %s161_s10 = sshll.u32 %s1927_s2, 4  ;;  %s140_s6 = int_to_ptr.vmem [resolvable:$true] %s139_s6  ;;  %s162_s10 = int_to_ptr.vmem [resolvable:$true] %s161_s10 }
  0x26   : > { %s992_s11 = scalar_lea.vmem %s151_s30, 16  ;;  %p1000_p5 = scmp.lt.s32.totalorder %s151_s30, %s151_s30 }
  0x27   : > { %p993_p0 = scmp.ne.s32.totalorder %s151_s30, %s992_s11  ;;  %p1001_p6 = scmp.lt.s32.totalorder %s992_s11, %s992_s11 }
  0x29   : > { %p995_p2 = pnand %p994_p1, %p993_p0  ;;  %p1002_p7 = por %p1001_p6, %p1000_p5 }
  0x2b   : > { %p996_p3 = pneg %p995_p2 }
  0x2d   : > { %p1003_p9 = pnand %p1002_p7, %p996_p3 }
  0x2f   : > { %1006 = shalt.err (!%p1003_p9)
}
  0x30   : > { %s1177_s18 = smov [#allocation5]   ;;  %s1007_s19 = scalar_lea.vmem %s140_s6, 16 }
  0x31   : > { %838 = dma.vmem_to_smem (!%p1280_p13), %s151_s30, 16, %s1177_s18, [#allocation6]  }
  0x32   : > { %p1008_p12 = scmp.ne.s32.totalorder %s140_s6, %s1007_s19  ;;  %p1015_p11 = scmp.lt.s32.totalorder %s140_s6, %s140_s6 }
  0x33   : > { %p1016_p10 = scmp.lt.s32.totalorder %s1007_s19, %s1007_s19 }
  0x34   : > { %p1010_p8 = pnand %p1008_p12, %p994_p1 }
  0x35   : > { %p1017_p0 = por %p1016_p10, %p1015_p11 }
  0x36   : > { %p1011_p4 = pneg %p1010_p8 }
  0x38   : > { %p1018_p2 = pnand %p1017_p0, %p1011_p4 }
  0x3a   : > { %1021 = shalt.err (!%p1018_p2)
}
  0x3b   : > { %s1178_s21 = smov [#allocation2]   ;;  %s1022_s23 = scalar_lea.vmem %s162_s10, 48 }
  0x3c   : > { %835 = dma.vmem_to_smem (!%p1280_p13), %s140_s6, 16, %s1178_s21, [#allocation4]  }
  0x3d   : > { %p1023_p3 = scmp.ne.s32.totalorder %s162_s10, %s1022_s23  ;;  %s1029_s28 = scalar_lea.vmem %s162_s10, 64 }
  0x3e   : > { %p1030_p7 = scmp.lt.s32.totalorder %s162_s10, %s162_s10  ;;  %p1031_p8 = scmp.lt.s32.totalorder %s1029_s28, %s1022_s23 }
  0x3f   : > { %p1025_p5 = pnand %p1023_p3, %p994_p1 }
  0x40   : > { %p1032_p9 = por %p1031_p8, %p1030_p7 }
  0x41   : > { %p1026_p6 = pneg %p1025_p5 }
  0x43   : > { %p1033_p12 = pnand %p1032_p9, %p1026_p6 }
  0x45   : > { %1036 = shalt.err (!%p1033_p12)
}
  0x46   : > { %s1179_s29 = smov [#allocation7]   ;;  %p1928_p4 = scmp.ne.s32.totalorder %s1922_s26, 0 }
  0x47   : > { %841 = dma.vmem_to_smem (!%p1280_p13), %s162_s10, 48, %s1179_s29, [#allocation6]  }
  0x48   : > { %174 = sbr.rel (%p1928_p4) target bundleno = 455 (0x1c7), region = 32 }
  0x4f   : > { %p1929_p10 = scmp.ne.s32.totalorder %s1923_s27, 0 }
  0x51   : > { %1102 = dma.done.wait (%p1929_p10), [#allocation4], 16  }
  0x52   : > { %1104 = vsyncadd (%p1929_p10), [#allocation4], 4294967280 }
  0x53   : > { %1106 = dma.done.wait (%p1929_p10), [#allocation6], 64  }
  0x54   : > { %1108 = vsyncadd (%p1929_p10), [#allocation6], 4294967232 }
  0x55   : > { %188 = sfence }
  0x56   : > { %s1889_s30 = sand.u32 1, %s1119_s13   ;;  %s1316_s26 = sld [smem:[#allocation2 + %s1127_s15]]  ;;  %v206_v0 = vlaneseq }
  0x57   : > { %s1320_s4 = smul.u32 96, %s1889_s30  ;;  %s1327_s6 = smov 0  }
  0x58   : > { %v207_v1 = vand.u32 127, %v206_v0 }
  0x59   : > { %1931 = sst [smem:[#allocation25_spill]] %s1320_s4 }
  0x5a   : > { %v211_v2 = vcvt.s32.f32 %v207_v1 }
  0x5c   : > { %1930 = sst [smem:[#allocation24_spill]] %s1316_s26  ;;  %v212_v3 = vadd.f32 0.5, %v211_v2 }
  0x5e   : > { %v1324_v4 = vmul.f32 0.015625, %v212_v3 }
  0x5f LB: >> { %s1932_s15 = sld [smem:[#allocation17_spill]]  ;;  %1933 = sst [smem:[#allocation26_spill]] %s1139_s6  ;;  %v224_v5 = vshrl.u32 %v206_v0, 7  ;;  %v1340_v12 = vmov 0.0   ;;  %v1342_v13 = vmov 0.0   ;;  %v1344_v14 = vmov 0.0   ;;  %s1139_s6 = sphi %s1327_s6, %s219_s6  }
  0x60   : >> { %s1890_s8 = sshll.u32 %s1139_s6, 3  ;;  %s1934_s26 = sld [smem:[#allocation24_spill]] }
  0x65   : >> { %s784_s7 = sshll.u32 %s1932_s15, 5 }
  0x66   : >> { %s222_s9 = sadd.s32 %s1890_s8, %s784_s7  ;;  %p786_p11 = scmp.gt.s32.totalorder %s1934_s26, 0 }
  0x67   : >> { %v225_v6 = vstv %s222_s9  ;;  %v1346_v15 = vmov (%p786_p11), 0.0   ;;  %v1348_v16 = vmov (%p786_p11), 0.0   ;;  %v1350_v17 = vmov (%p786_p11), 0.0   ;;  %s1354_s10 = smov (%p786_p11), 0  }
  0x68   : >> { %v226_v7 = vadd.s32 %v225_v6, %v224_v5  ;;  %v1352_v18 = vmov (%p786_p11), 0.0  }
  0x6a   : >> { %v227_v8 = vcvt.s32.f32 %v226_v7  ;;  %707 = sbr.rel (!%p786_p11) target bundleno = 421 (0x1a5), region = 101 }
  0x6c   : >> { %v228_v9 = vadd.f32 0.5, %v227_v8 }
  0x6e   : >> { %v229_v10 = vmul.f32 0.015625, %v228_v9 }
  0x70   : >> { %v1337_v11 = vsub.f32 1.0, %v229_v10 }
  0x71 LB: >>> { %s1935_s15 = sld [smem:[#allocation17_spill]]  ;;  %s788_s11 = sshll.u32 %s1159_s10, 2  ;;  %vm279_vm5 = vcmp.eq.f32.partialorder %v1155_v18, 0.0  ;;  %s1159_s10 = sphi %s1354_s10, %s595_s10   ;;  %v1155_v18 = vphi %v1352_v18, %v560_v18   ;;  %v1151_v17 = vphi %v1350_v17, %v1959_v17   ;;  %v1147_v16 = vphi %v1348_v16, %v1958_v16   ;;  %v1143_v15 = vphi %v1346_v15, %v1957_v15  }
  0x72   : >>> { %s562_s21 = ssub.s32 0, %s1159_s10  ;;  %p561_p13 = scmp.lt.s32.totalorder %s1159_s10, 0 }
  0x73   : >>> { %s1377_s7 = smin.u32 %s1159_s10, %s562_s21 }
  0x74   : >>> { %s1891_s30 = sand.u32 7, %s1377_s7  }
  0x77   : >>> { %s1936_s5 = sshll.u32 %s1935_s15, 4 }
  0x78   : >>> { %s245_s18 = sadd.s32 %s788_s11, %s1936_s5  ;;  %s1390_s11 = ssub.s32 0, %s1891_s30 }
  0x79   : >>> { %s246_s19 = sld [smem:[#allocation5 + %s245_s18]]  ;;  %s324_s23 = sadd.s32 1, %s245_s18 }
  0x7a   : >>> { %s403_s28 = sadd.s32 2, %s245_s18  ;;  %s482_s29 = sadd.s32 3, %s245_s18 }
  0x7b   : >>> { %s1379_s9 = sld [smem:[#allocation5 + %s324_s23]] }
  0x7c   : >>> { %s1382_s27 = sld [smem:[#allocation5 + %s403_s28]] }
  0x7d   : >>> { %s1384_s8 = sld [smem:[#allocation5 + %s482_s29]] }
  0x7f   : >>> { %s1386_s0 = sshll.u32 %s246_s19, 4 }
  0x80   : >>> { %s1393_s18 = sld [smem:[#allocation7 + %s1386_s0]]  ;;  %s249_s21 = sadd.s32 1, %s1386_s0 }
  0x81   : >>> { %s1396_s23 = sld [smem:[#allocation7 + %s249_s21]]  ;;  %s251_s19 = sadd.s32 2, %s1386_s0 }
  0x82   : >>> { %s1399_s28 = sld [smem:[#allocation7 + %s251_s19]]  ;;  %s253_s29 = sadd.s32 3, %s1386_s0 }
  0x83   : >>> { %s1402_s5 = sld [smem:[#allocation7 + %s253_s29]]  ;;  %s255_s1 = sadd.s32 4, %s1386_s0 }
  0x84   : >>> { %s1405_s2 = sld [smem:[#allocation7 + %s255_s1]]  ;;  %s257_s30 = sadd.s32 5, %s1386_s0 }
  0x85   : >>> { %s1408_s20 = sld [smem:[#allocation7 + %s257_s30]]  ;;  %s281_s16 = sadd.s32 6, %s1386_s0 }
  0x86   : >>> { %s1411_s21 = sld [smem:[#allocation7 + %s281_s16]]  ;;  %s283_s19 = sadd.s32 7, %s1386_s0  ;;  %v259_v19 = vstv %s1393_s18 }
  0x87   : >>> { %s1414_s25 = sld [smem:[#allocation7 + %s283_s19]]  ;;  %s285_s29 = sadd.s32 8, %s1386_s0  ;;  %v261_v20 = vstv %s1396_s23  ;;  %v260_v23 = vmul.f32 %v259_v19, %v1324_v4 }
  0x88   : >>> { %s1417_s14 = sld [smem:[#allocation7 + %s285_s29]]  ;;  %s287_s1 = sadd.s32 9, %s1386_s0  ;;  %v262_v24 = vmul.f32 %v261_v20, %v1337_v11  ;;  %v264_v29 = vstv %s1399_s28 }
  0x89   : >>> { %s1420_s24 = sld [smem:[#allocation7 + %s287_s1]]  ;;  %s289_s30 = sadd.s32 10, %s1386_s0  ;;  %v266_v21 = vstv %s1402_s5 }
  0x8a   : >>> { %s1423_s12 = sld [smem:[#allocation7 + %s289_s30]]  ;;  %s291_s17 = sadd.s32 11, %s1386_s0  ;;  %v268_v22 = vstv %s1405_s2  ;;  %v267_v25 = vmul.f32 %v266_v21, %v1324_v4  ;;  %v263_v27 = vadd.f32 %v262_v24, %v260_v23 }
  0x8b   : >>> { %s1426_s3 = sld [smem:[#allocation7 + %s291_s17]]  ;;  %s293_s16 = sadd.s32 12, %s1386_s0  ;;  %v269_v26 = vmul.f32 %v268_v22, %v1337_v11  ;;  %v271_v30 = vstv %s1408_s20 }
  0x8c   : >>> { %s1429_s22 = sld [smem:[#allocation7 + %s293_s16]]  ;;  %s295_s15 = sadd.s32 13, %s1386_s0  ;;  %v265_v33 = vadd.f32 %v264_v29, %v263_v27  ;;  %v301_v46 = vstv %s1411_s21 }
  0x8d   : >>> { %s1436_s19 = sld [smem:[#allocation7 + %s295_s15]]  ;;  %s297_s29 = sadd.s32 14, %s1386_s0  ;;  %v270_v28 = vadd.f32 %v269_v26, %v267_v25  ;;  %v309_v49 = vstv %s1414_s25 }
  0x8e   : >>> { %s1439_s13 = sld [smem:[#allocation7 + %s297_s29]]  ;;  %s1442_s1 = sshll.u32 %s1379_s9, 4  ;;  %vm273_vm0 = vcmp.ge.f32.partialorder %v265_v33, 0.0  ;;  %v317_v59 = vstv %s1417_s14 }
  0x8f   : >>> { %s1445_s17 = sld [smem:[#allocation7 + %s1442_s1]]  ;;  %s328_s30 = sadd.s32 1, %s1442_s1  ;;  %v1478_v34 = vadd.f32 %v271_v30, %v270_v28  ;;  %v299_v37 = vstv %s1420_s24 }
  0x90   : >>> { %s1452_s0 = sld [smem:[#allocation7 + %s328_s30]]  ;;  %s330_s2 = sadd.s32 2, %s1442_s1  ;;  %v300_v43 = vmul.f32 %v299_v37, %v265_v33  ;;  %v307_v44 = vstv %s1423_s12 }
  0x91   : >>> { %s1455_s15 = sld [smem:[#allocation7 + %s330_s2]]  ;;  %s332_s5 = sadd.s32 3, %s1442_s1  ;;  %v276_v42 = vadd.f32 %v1478_v34, %v265_v33  ;;  %vm274_vm1 = vcmp.ge.f32.partialorder %v1478_v34, 0.0  ;;  %v315_v45 = vstv %s1426_s3  ;;  %v308_v53 = vmul.f32 %v307_v44, %v265_v33 }
  0x92   : >>> { %s1458_s9 = sld [smem:[#allocation7 + %s332_s5]]  ;;  %s334_s18 = sadd.s32 4, %s1442_s1  ;;  %v303_v47 = vstv %s1429_s22  ;;  %vm1524_vm2 = vmand %vm273_vm0, %vm274_vm1  ;;  %v316_v54 = vmul.f32 %v315_v45, %v265_v33  ;;  %v302_v56 = vadd.f32 %v301_v46, %v300_v43 }
  0x93   : >>> { %s335_s23 = sld [smem:[#allocation7 + %s334_s18]]  ;;  %s336_s16 = sadd.s32 5, %s1442_s1  ;;  %vm277_vm3 = vcmp.le.f32.partialorder %v276_v42, 1.0  ;;  %v304_v57 = vmul.f32 %v303_v47, %v1478_v34  ;;  %v311_v58 = vstv %s1436_s19  ;;  %v310_v1 = vadd.f32 %v309_v49, %v308_v53 }
  0x94   : >>> { %s1462_s29 = sld [smem:[#allocation7 + %s336_s16]]  ;;  %s360_s30 = sadd.s32 6, %s1442_s1  ;;  %v319_v60 = vstv %s1439_s13  ;;  %vm1545_vm4 = vmand %vm1524_vm2, %vm277_vm3  ;;  %v312_v2 = vmul.f32 %v311_v58, %v1478_v34  ;;  %v318_v3 = vadd.f32 %v317_v59, %v316_v54 }
  0x95   : >>> { %s1467_s2 = sld [smem:[#allocation7 + %s360_s30]]  ;;  %s362_s4 = sadd.s32 7, %s1442_s1  ;;  %v338_v31 = vstv %s1445_s17  ;;  %v1560_v6 = vadd.f32 %v304_v57, %v302_v56  ;;  %v320_v7 = vmul.f32 %v319_v60, %v1478_v34  ;;  %v1571_v10 = vsel %vm1545_vm4, 1.0, %v1155_v18  ;;  %vm1630_vm10 = vmand %vm1545_vm4, %vm279_vm5 }
  0x96   : >>> { %s1470_s5 = sld [smem:[#allocation7 + %s362_s4]]  ;;  %s364_s6 = sadd.s32 8, %s1442_s1  ;;  %v340_v32 = vstv %s1452_s0  ;;  %v339_v38 = vmul.f32 %v338_v31, %v1324_v4  ;;  %v1616_v37 = vadd.f32 %v312_v2, %v310_v1  ;;  %vm358_vm12 = vcmp.eq.f32.partialorder %v1571_v10, 0.0 }
  0x97   : >>> { %s1475_s18 = sld [smem:[#allocation7 + %s364_s6]]  ;;  %s366_s26 = sadd.s32 9, %s1442_s1  ;;  %v341_v39 = vmul.f32 %v340_v32, %v1337_v11  ;;  %v343_v50 = vstv %s1455_s15 }
  0x98   : >>> { %v345_v35 = vstv %s1458_s9  ;;  %s1481_s20 = sld [smem:[#allocation7 + %s366_s26]]  ;;  %s368_s28 = sadd.s32 10, %s1442_s1  ;;  %v314_v52 = vsel %vm1630_vm10, %v1616_v37, %v1147_v16 }
  0x99   : >>> { %v347_v36 = vstv %s335_s23  ;;  %s1484_s16 = sld [smem:[#allocation7 + %s368_s28]]  ;;  %s370_s4 = sadd.s32 11, %s1442_s1  ;;  %v346_v40 = vmul.f32 %v345_v35, %v1324_v4  ;;  %v342_v48 = vadd.f32 %v341_v39, %v339_v38  ;;  %v1618_v38 = vadd.f32 %v320_v7, %v318_v3 }
  0x9a   : >>> { %s1490_s6 = sld [smem:[#allocation7 + %s370_s4]]  ;;  %s372_s17 = sadd.s32 12, %s1442_s1  ;;  %v348_v41 = vmul.f32 %v347_v36, %v1337_v11  ;;  %v350_v55 = vstv %s1462_s29 }
  0x9b   : >>> { %s1495_s26 = sld [smem:[#allocation7 + %s372_s17]]  ;;  %s374_s0 = sadd.s32 13, %s1442_s1  ;;  %v344_v61 = vadd.f32 %v343_v50, %v342_v48  ;;  %v380_v26 = vstv %s1467_s2 }
  0x9c   : >>> { %s1499_s24 = sld [smem:[#allocation7 + %s374_s0]]  ;;  %s376_s9 = sadd.s32 14, %s1442_s1  ;;  %v349_v51 = vadd.f32 %v348_v41, %v346_v40  ;;  %v388_v31 = vstv %s1470_s5 }
  0x9d   : >>> { %s1505_s23 = sld [smem:[#allocation7 + %s376_s9]]  ;;  %s1508_s30 = sshll.u32 %s1382_s27, 4  ;;  %vm352_vm6 = vcmp.ge.f32.partialorder %v344_v61, 0.0  ;;  %v396_v40 = vstv %s1475_s18 }
  0x9e   : >>> { %s1513_s28 = sld [smem:[#allocation7 + %s1508_s30]]  ;;  %s407_s1 = sadd.s32 1, %s1508_s30  ;;  %v1550_v63 = vadd.f32 %v350_v55, %v349_v51  ;;  %v378_v12 = vstv %s1481_s20  ;;  %v306_v51 = vsel %vm1630_vm10, %v1560_v6, %v1151_v17  ;;  %v322_v17 = vsel %vm1630_vm10, %v1618_v38, %v1143_v15 }
  0x9f   : >>> { %s1518_s3 = sld [smem:[#allocation7 + %s407_s1]]  ;;  %s409_s12 = sadd.s32 2, %s1508_s30  ;;  %v386_v19 = vstv %s1484_s16  ;;  %v379_v25 = vmul.f32 %v378_v12, %v344_v61 }
  0xa0   : >>> { %s1529_s22 = sld [smem:[#allocation7 + %s409_s12]]  ;;  %s411_s25 = sadd.s32 3, %s1508_s30  ;;  %vm353_vm7 = vcmp.ge.f32.partialorder %v1550_v63, 0.0  ;;  %v355_v14 = vadd.f32 %v1550_v63, %v344_v61  ;;  %v394_v27 = vstv %s1490_s6  ;;  %v387_v30 = vmul.f32 %v386_v19, %v344_v61 }
  0xa1   : >>> { %s1535_s27 = sld [smem:[#allocation7 + %s411_s25]]  ;;  %s413_s21 = sadd.s32 4, %s1508_s30  ;;  %v382_v29 = vstv %s1495_s26  ;;  %vm1606_vm8 = vmand %vm352_vm6, %vm353_vm7  ;;  %v395_v39 = vmul.f32 %v394_v27, %v344_v61  ;;  %v381_v42 = vadd.f32 %v380_v26, %v379_v25 }
  0xa2   : >>> { %s1539_s15 = sld [smem:[#allocation7 + %s413_s21]]  ;;  %s415_s29 = sadd.s32 5, %s1508_s30  ;;  %vm356_vm9 = vcmp.le.f32.partialorder %v355_v14, 1.0  ;;  %v390_v34 = vstv %s1499_s24  ;;  %v383_v43 = vmul.f32 %v382_v29, %v1550_v63  ;;  %v389_v46 = vadd.f32 %v388_v31, %v387_v30 }
  0xa3   : >>> { %s1552_s14 = sld [smem:[#allocation7 + %s415_s29]]  ;;  %s439_s13 = sadd.s32 6, %s1508_s30  ;;  %v398_v44 = vstv %s1505_s23  ;;  %vm1645_vm11 = vmand %vm1606_vm8, %vm356_vm9  ;;  %v391_v47 = vmul.f32 %v390_v34, %v1550_v63  ;;  %v397_v53 = vadd.f32 %v396_v40, %v395_v39 }
  0xa4   : >>> { %v417_v5 = vstv %s1513_s28  ;;  %s1557_s19 = sld [smem:[#allocation7 + %s439_s13]]  ;;  %s441_s4 = sadd.s32 7, %s1508_s30  ;;  %v399_v54 = vmul.f32 %v398_v44, %v1550_v63  ;;  %v384_v55 = vadd.f32 %v383_v43, %v381_v42  ;;  %v1682_v16 = vsel %vm1645_vm11, 1.0, %v1571_v10  ;;  %vm1731_vm2 = vmand %vm1645_vm11, %vm358_vm12 }
  0xa5   : >>> { %v418_v8 = vmul.f32 %v417_v5, %v1324_v4  ;;  %v419_v9 = vstv %s1518_s3  ;;  %s1565_s17 = sld [smem:[#allocation7 + %s441_s4]]  ;;  %s443_s0 = sadd.s32 8, %s1508_s30  ;;  %v392_v60 = vadd.f32 %v391_v47, %v389_v46  ;;  %vm437_vm3 = vcmp.eq.f32.partialorder %v1682_v16, 0.0 }
  0xa6   : >>> { %v420_v13 = vmul.f32 %v419_v9, %v1337_v11  ;;  %s1575_s9 = sld [smem:[#allocation7 + %s443_s0]]  ;;  %s445_s28 = sadd.s32 9, %s1508_s30  ;;  %v422_v22 = vstv %s1529_s22  ;;  %v400_v1 = vadd.f32 %v399_v54, %v397_v53 }
  0xa7   : >>> { %v424_v20 = vstv %s1535_s27  ;;  %s1582_s1 = sld [smem:[#allocation7 + %s445_s28]]  ;;  %s447_s3 = sadd.s32 10, %s1508_s30  ;;  %v393_v31 = vsel %vm1731_vm2, %v392_v60, %v314_v52 }
  0xa8   : >>> { %v421_v21 = vadd.f32 %v420_v13, %v418_v8  ;;  %v425_v23 = vmul.f32 %v424_v20, %v1324_v4  ;;  %v426_v24 = vstv %s1539_s15  ;;  %s1588_s20 = sld [smem:[#allocation7 + %s447_s3]]  ;;  %s449_s12 = sadd.s32 11, %s1508_s30 }
  0xa9   : >>> { %v427_v28 = vmul.f32 %v426_v24, %v1337_v11  ;;  %s1594_s16 = sld [smem:[#allocation7 + %s449_s12]]  ;;  %s451_s25 = sadd.s32 12, %s1508_s30  ;;  %v429_v32 = vstv %s1552_s14 }
  0xaa   : >>> { %s1600_s22 = sld [smem:[#allocation7 + %s451_s25]]  ;;  %s453_s27 = sadd.s32 13, %s1508_s30  ;;  %v1611_v35 = vadd.f32 %v422_v22, %v421_v21  ;;  %v459_v57 = vstv %s1557_s19 }
  0xab   : >>> { %v428_v36 = vadd.f32 %v427_v28, %v425_v23  ;;  %s1613_s2 = sld [smem:[#allocation7 + %s453_s27]]  ;;  %s455_s5 = sadd.s32 14, %s1508_s30  ;;  %v467_v62 = vstv %s1565_s17  ;;  %v385_v28 = vsel %vm1731_vm2, %v384_v55, %v306_v51 }
  0xac   : >>> { %s1621_s6 = sld [smem:[#allocation7 + %s455_s5]]  ;;  %s1624_s26 = sshll.u32 %s1384_s8, 4  ;;  %vm431_vm13 = vcmp.ge.f32.partialorder %v1611_v35, 0.0  ;;  %v475_v9 = vstv %s1575_s9 }
  0xad   : >>> { %v1636_v45 = vadd.f32 %v429_v32, %v428_v36  ;;  %s1639_s8 = sld [smem:[#allocation7 + %s1624_s26]]  ;;  %s486_s18 = sadd.s32 1, %s1624_s26  ;;  %v457_v48 = vstv %s1582_s1  ;;  %v401_v32 = vsel %vm1731_vm2, %v400_v1, %v322_v17 }
  0xae   : >>> { %s1652_s24 = sld [smem:[#allocation7 + %s486_s18]]  ;;  %s488_s23 = sadd.s32 2, %s1624_s26  ;;  %v465_v50 = vstv %s1588_s20  ;;  %v458_v56 = vmul.f32 %v457_v48, %v1611_v35 }
  0xaf   : >>> { %vm432_vm14 = vcmp.ge.f32.partialorder %v1636_v45, 0.0  ;;  %v434_v49 = vadd.f32 %v1636_v45, %v1611_v35  ;;  %s1660_s30 = sld [smem:[#allocation7 + %s488_s23]]  ;;  %s490_s21 = sadd.s32 3, %s1624_s26  ;;  %v466_v58 = vmul.f32 %v465_v50, %v1611_v35  ;;  %v473_v59 = vstv %s1594_s16 }
  0xb0   : >>> { %s1672_s15 = sld [smem:[#allocation7 + %s490_s21]]  ;;  %s492_s29 = sadd.s32 4, %s1624_s26  ;;  %vm1692_vm15 = vmand %vm431_vm13, %vm432_vm14  ;;  %v461_v61 = vstv %s1600_s22  ;;  %v460_v7 = vadd.f32 %v459_v57, %v458_v56  ;;  %v474_v8 = vmul.f32 %v473_v59, %v1611_v35 }
  0xb1   : >>> { %s1685_s14 = sld [smem:[#allocation7 + %s492_s29]]  ;;  %s494_s13 = sadd.s32 5, %s1624_s26  ;;  %vm435_vm0 = vcmp.le.f32.partialorder %v434_v49, 1.0  ;;  %v469_v2 = vstv %s1613_s2  ;;  %v462_v14 = vmul.f32 %v461_v61, %v1636_v45  ;;  %v468_v19 = vadd.f32 %v467_v62, %v466_v58 }
  0xb2   : >>> { %s1699_s4 = sld [smem:[#allocation7 + %s494_s13]]  ;;  %s518_s0 = sadd.s32 6, %s1624_s26  ;;  %vm1717_vm1 = vmand %vm1692_vm15, %vm435_vm0  ;;  %v470_v22 = vmul.f32 %v469_v2, %v1636_v45  ;;  %v477_v25 = vstv %s1621_s6  ;;  %v476_v33 = vadd.f32 %v475_v9, %v474_v8 }
  0xb3   : >>> { %v496_v63 = vstv %s1639_s8  ;;  %s1705_s28 = sld [smem:[#allocation7 + %s518_s0]]  ;;  %s520_s1 = sadd.s32 7, %s1624_s26  ;;  %v481_v26 = vsel %vm1717_vm1, 1.0, %v1682_v16  ;;  %v463_v35 = vadd.f32 %v462_v14, %v460_v7  ;;  %v478_v37 = vmul.f32 %v477_v25, %v1636_v45  ;;  %vm1786_vm6 = vmand %vm1717_vm1, %vm437_vm3 }
  0xb4   : >>> { %v497_v3 = vmul.f32 %v496_v63, %v1324_v4  ;;  %v498_v5 = vstv %s1652_s24  ;;  %s1711_s19 = sld [smem:[#allocation7 + %s520_s1]]  ;;  %s522_s3 = sadd.s32 8, %s1624_s26  ;;  %v471_v36 = vadd.f32 %v470_v22, %v468_v19  ;;  %vm516_vm4 = vcmp.eq.f32.partialorder %v481_v26, 0.0 }
  0xb5   : >>> { %v499_v12 = vmul.f32 %v498_v5, %v1337_v11  ;;  %s1724_s17 = sld [smem:[#allocation7 + %s522_s3]]  ;;  %s524_s20 = sadd.s32 9, %s1624_s26  ;;  %v501_v20 = vstv %s1660_s30  ;;  %v479_v48 = vadd.f32 %v478_v37, %v476_v33  ;;  %v464_v17 = vsel %vm1786_vm6, %v463_v35, %v385_v28 }
  0xb6   : >>> { %v503_v21 = vstv %s1672_s15  ;;  %s1738_s9 = sld [smem:[#allocation7 + %s524_s20]]  ;;  %s526_s12 = sadd.s32 10, %s1624_s26  ;;  %v472_v15 = vsel %vm1786_vm6, %v471_v36, %v393_v31 }
  0xb7   : >>> { %v500_v10 = vadd.f32 %v499_v12, %v497_v3  ;;  %v504_v23 = vmul.f32 %v503_v21, %v1324_v4  ;;  %v505_v24 = vstv %s1685_s14  ;;  %s1744_s16 = sld [smem:[#allocation7 + %s526_s12]]  ;;  %s528_s25 = sadd.s32 11, %s1624_s26  ;;  %v480_v59 = vsel %vm1786_vm6, %v479_v48, %v401_v32 }
  0xb8   : >>> { %v506_v27 = vmul.f32 %v505_v24, %v1337_v11  ;;  %s1752_s22 = sld [smem:[#allocation7 + %s528_s25]]  ;;  %s530_s27 = sadd.s32 12, %s1624_s26  ;;  %v508_v30 = vstv %s1699_s4 }
  0xb9   : >>> { %v502_v29 = vadd.f32 %v501_v20, %v500_v10  ;;  %s1759_s2 = sld [smem:[#allocation7 + %s530_s27]]  ;;  %s532_s5 = sadd.s32 13, %s1624_s26  ;;  %v538_v40 = vstv %s1705_s28 }
  0xba   : >>> { %v507_v34 = vadd.f32 %v506_v27, %v504_v23  ;;  %s1766_s6 = sld [smem:[#allocation7 + %s532_s5]]  ;;  %s534_s8 = sadd.s32 14, %s1624_s26  ;;  %v546_v43 = vstv %s1711_s19 }
  0xbb   : >>> { %s1770_s18 = sld [smem:[#allocation7 + %s534_s8]]  ;;  %vm510_vm5 = vcmp.ge.f32.partialorder %v502_v29, 0.0  ;;  %s1953_s24 = sand.u32 7, %s1377_s7   ;;  %v554_v44 = vstv %s1724_s17 }
  0xbc   : >>> { %v509_v38 = vadd.f32 %v508_v30, %v507_v34  ;;  %v536_v39 = vstv %s1738_s9  ;;  %s1987_s11 = smov (!%p561_p13, %s1390_s11), %s1953_s24 }
  0xbd   : >>> { %v537_v41 = vmul.f32 %v536_v39, %v502_v29  ;;  %v544_v42 = vstv %s1744_s16  ;;  %p795_p1 = scmp.lt.s32.totalorder %s1987_s11, 0  ;;  %s571_s7 = sadd.s32 8, %s1987_s11 }
  0xbe   : >>> { %vm511_vm7 = vcmp.ge.f32.partialorder %v509_v38, 0.0  ;;  %v513_v18 = vadd.f32 %v509_v38, %v502_v29  ;;  %v545_v46 = vmul.f32 %v544_v42, %v502_v29  ;;  %v552_v47 = vstv %s1752_s22 }
  0xbf   : >>> { %vm512_vm8 = vmand %vm510_vm5, %vm511_vm7  ;;  %v539_v49 = vadd.f32 %v538_v40, %v537_v41  ;;  %v540_v50 = vstv %s1759_s2  ;;  %v553_v51 = vmul.f32 %v552_v47, %v502_v29  ;;  %s1989_s7 = smov (!%p795_p1, %s571_s7), %s1987_s11  ;;  %s1161_s11 = smov 0  }
  0xc0   : >>> { %vm514_vm9 = vcmp.le.f32.partialorder %v513_v18, 1.0  ;;  %v541_v52 = vmul.f32 %v540_v50, %v509_v38  ;;  %v547_v53 = vadd.f32 %v546_v43, %v545_v46  ;;  %v548_v54 = vstv %s1766_s6  ;;  %p796_p0 = scmp.ne.s32.totalorder %s1989_s7, 7 }
  0xc1   : >>> { %vm515_vm10 = vmand %vm512_vm8, %vm514_vm9  ;;  %v549_v55 = vmul.f32 %v548_v54, %v509_v38  ;;  %v555_v16 = vadd.f32 %v554_v44, %v553_v51  ;;  %v556_v56 = vstv %s1770_s18  ;;  %vm577_vm12 = vcmask (!%p796_p0), 523264  }
  0xc2   : >>> { %vm517_vm11 = vmand %vm515_vm10, %vm516_vm4  ;;  %v542_v57 = vadd.f32 %v541_v52, %v539_v49  ;;  %v557_v58 = vmul.f32 %v556_v56, %v509_v38  ;;  %v560_v18 = vsel %vm515_vm10, 1.0, %v481_v26   ;;  %576 = sbr.rel (%p796_p0) target bundleno = 403 (0x193), region = 62 }
  0xc3   : >>> { %v550_v60 = vadd.f32 %v549_v55, %v547_v53  ;;  %v578_v2 = vsel (!%p796_p0), %vm577_vm12, %v560_v18, 0.0 }
  0xc4   : >>> { %v543_v61 = vsel %vm517_vm11, %v542_v57, %v464_v17   ;;  %v558_v62 = vadd.f32 %v557_v58, %v555_v16  ;;  %579 = vadd.xlane.f32.xlu0 (!%p796_p0), %v578_v2 }
  0xc5   : >>> { %v551_v63 = vsel %vm517_vm11, %v550_v60, %v472_v15  }
  0xc6   : >>> { %v559_v1 = vsel %vm517_vm11, %v558_v62, %v480_v59  }
 0x151   : >>> { %v580_v3 = vpop.xlane.xlu0 %579 }
 0x152   : >>> { %v581_v5 = vrot.slane %v580_v3, 4 }
 0x154   : >>> { %v582_v6 = vadd.f32 %v581_v5, %v580_v3 }
 0x156   : >>> { %v583_v7 = vrot.slane %v582_v6, 2 }
 0x158   : >>> { %v584_v8 = vadd.f32 %v583_v7, %v582_v6 }
 0x15a   : >>> { %v585_v9 = vrot.slane %v584_v8, 1 }
 0x15c   : >>> { %v586_v12 = vadd.f32 %v585_v9, %v584_v8 }
 0x15e   : >>> { %808 = vpush %v586_v12 }
 0x18f   : >>> { %s809_s26 = spop %808 }
 0x190   : >>> { %p588_p2 = scmp.ge.f32.partialorder %s809_s26, 512.0 }
 0x192   : >>> { %s589_s11 = scalar_select %p588_p2, 1, 0  }
 0x193 PF: >>> { %s1991_s11 = smov (%p796_p0, %s1163_s11), 0  ;;  %s595_s10 = sadd.s32 1, %s1159_s10   ;;  %v1957_v15 = vmov %v559_v1  ;;  %v1958_v16 = vmov %v551_v63  ;;  %v1959_v17 = vmov %v543_v61  ;;  %s1163_s11 = sphi %s1161_s11, %s589_s11  }
 0x194   : >>> { %s1956_s23 = sld [smem:[#allocation24_spill]]  ;;  %p239_p5 = scmp.eq.s32.totalorder %s1991_s11, 0 }
 0x19a   : >>> { %p238_p3 = scmp.lt.s32.totalorder %s595_s10, %s1956_s23 }
 0x19c   : >>> { %p240_p6 = pnand %p239_p5, %p238_p3 }
 0x19d   : >> { %v1960_v12 = vmov (%p240_p6), %v559_v1  ;;  %v1961_v13 = vmov (%p240_p6), %v551_v63  ;;  %v1962_v14 = vmov (%p240_p6), %v543_v61 }
 0x19e   : >> { %243 = sbr.rel (!%p240_p6) target bundleno = 113 (0x71), region = 107 }
 0x1a5 PF: >> { %s1963_s30 = sld [smem:[#allocation26_spill]]  ;;  %s1965_s15 = sld [smem:[#allocation25_spill]]  ;;  %vm597_vm13 = vcmask 523264   ;;  %v1175_v14 = vphi %v1344_v14, %v1962_v14   ;;  %v1171_v13 = vphi %v1342_v13, %v1961_v13   ;;  %v1167_v12 = vphi %v1340_v12, %v1960_v12  }
 0x1ab   : >> { %s1964_s21 = sshll.u32 %s1963_s30, 3  ;;  %s1966_s29 = scalar_lea.vmem [#allocation8], %s1965_s15 }
 0x1ac   : >> { %s596_s10 = scalar_lea.vmem %s1966_s29, %s1964_s21 [#allocation8]  ;;  %s219_s6 = sadd.s32 1, %s1963_s30  }
 0x1ad   : >> { %598 = vst.msk [vmem:[%s596_s10] sm:$0xff] %vm597_vm13, %v1175_v14  ;;  %798 = vst.msk [vmem:[%s596_s10 + $0x20] sm:$0xff] %vm597_vm13, %v1171_v13  ;;  %p216_p7 = scmp.ge.s32.totalorder %s219_s6, 4  }
 0x1ae   : >> { %800 = vst.msk [vmem:[%s596_s10 + $0x40] sm:$0xff] %vm597_vm13, %v1167_v12  ;;  %s1967_s14 = sld [smem:[#allocation15_spill]] (%p216_p7) }
 0x1af   : > { %218 = sbr.rel (!%p216_p7) target bundleno = 95 (0x5f), region = 118 }
 0x1b4   : > { %s1968_s13 = sand.u32 (%p216_p7), 1, %s1967_s14  }
 0x1b5   : > { %s606_s4 = scalar_lea.sflag (%p216_p7), [#allocation3], %s1968_s13 }
 0x1b6   : > { %s1969_s0 = sld [smem:[#allocation17_spill]]  ;;  %s1970_s28 = sld [smem:[#allocation25_spill]] }
 0x1b7   : > { %s1971_s1 = sld [smem:[#allocation21_spill]]  ;;  %s1973_s12 = sld [smem:[#allocation30_spill]] }
 0x1b8   : > { %s1180_s25 = smov 512   ;;  %s1181_s22 = smov 1024  }
 0x1b9   : > { %s1182_s27 = smov 4   ;;  %s1183_s2 = smov 128  }
 0x1ba   : > { %s1184_s5 = smov 8   ;;  %s1185_s6 = smov [#allocation9]  }
 0x1bb   : > { %s1186_s8 = smov 0  }
 0x1bc   : > { %s806_s19 = sshll.u32 %s1969_s0, 9  ;;  %s1972_s3 = scalar_lea.vmem [#allocation8], %s1970_s28 }
 0x1bd   : > { %s636_s17 = sshll.u32 %s1972_s3, 4  ;;  %s619_s16 = scalar_lea.hbm %s1973_s12, %s806_s19  ;;  %s637_s17 = int_to_ptr.vmem [resolvable:$true] %s636_s17 }
 0x1be   : > { %p1974_p8 = scmp.ne.s32.totalorder %s1971_s1, 0 }
 0x1c0   : > { %824 = sst [smem:[#allocation10]] (%p1974_p8), %s1180_s25 }
 0x1c1   : > { %825 = sst [smem:[#allocation10 + $0x1]] (%p1974_p8), %s1181_s22 }
 0x1c2   : > { %826 = sst [smem:[#allocation10 + $0x2]] (%p1974_p8), %s1182_s27 }
 0x1c3   : > { %827 = sst [smem:[#allocation10 + $0x3]] (%p1974_p8), %s1183_s2 }
 0x1c4   : > { %828 = sst [smem:[#allocation10 + $0x4]] (%p1974_p8), %s1183_s2 }
 0x1c5   : > { %829 = sst [smem:[#allocation10 + $0x5]] (%p1974_p8), %s1184_s5 }
 0x1c6   : > { %830 = dma.general (%p1974_p8), %s637_s17, 1536, %s619_s16, %s606_s4, %s1185_s6, [#allocation10], %s1186_s8, 0  }
 0x1c7 PF: > { %s1975_s18 = sld [smem:[#allocation19_spill]]  ;;  %s1976_s24 = sld [smem:[#allocation14_spill]] }
 0x1c8   : > { %s1977_s7 = sld [smem:[#allocation22_spill]] }
 0x1cd   : > { %p853_p9 = scmp.ge.s32.totalorder %s1975_s18, 2  ;;  %s664_s11 = sand.u32 1, %s1976_s24  }
 0x1ce   : > { %p1978_p12 = scmp.ne.s32.totalorder %s1977_s7, 0  ;;  %s665_s26 = scalar_lea.sflag [#allocation3], %s664_s11 }
 0x1d0   : > { %p843_p4 = pnand %p853_p9, %p1978_p12 }
 0x1d2   : > { %1110 = dma.done.wait (!%p843_p4), %s665_s26, 1536  }
 0x1d3   : > { %1112 = vsyncadd (!%p843_p4), %s665_s26, 4294965760  ;;  %s18_s17 = sadd.s32 1, %s1975_s18   ;;  %s1979_s12 = sld [smem:[#allocation15_spill]] }
 0x1d4   : > { %p15_p10 = scmp.ge.s32.totalorder %s18_s17, 4   ;;  %s1980_s13 = sld [smem:[#allocation16_spill]] }
 0x1d5   : > { %s1981_s14 = sld [smem:[#allocation23_spill]]  ;;  %s1982_s15 = sld [smem:[#allocation18_spill]] }
 0x1d6   : > { %s1983_s16 = sld [smem:[#allocation20_spill]]  ;;  %17 = sbr.rel (!%p15_p10) target bundleno = 11 (0xb), region = 129 }
 0x1dd   :  { %670 = vsyncpa [#allocation3], 1 }
 0x1de   :  { %672 = vsyncpa [#allocation3 + $0x1], 1 }
 0x1df   :  { %673 = vsyncpa [#allocation4], 1 }
 0x1e0   :  { %675 = vsyncpa [#allocation4 + $0x1], 1 }
 0x1e1   :  { %676 = vsyncpa [#allocation6], 1 }

</bundles_post_ra>
